<compile_context>
chip_gen: v7x
topology: tpu7x:2x2x1
jax: 0.10.0
libtpu: 0.0.40
codegen_flags: <defaults>
</compile_context>

<pallas_src>
import functools
import numpy as np
import jax
import jax.numpy as jnp
from jax.experimental import pallas as pl
from jax.experimental.pallas import tpu as pltpu

# ---------------- irreps configuration (concrete, small) ----------------
# irreps_block = "4x0e + 4x1o"  (dim 16), irreps_out = "2x0e + 2x1o" (dim 8)
IRREPS_BLOCK = [(4, 0, +1), (4, 1, -1)]   # (mul, l, parity)
IRREPS_OUT   = [(2, 0, +1), (2, 1, -1)]
NODE_DIM = 32
HIDDEN = 64
QHALF = 64    # half-stripe width: two D_in blocks share one 128-lane stripe (Q <= 64)


def ir_dim(l):
    return 2 * l + 1


def irreps_dim(irreps):
    return sum(m * ir_dim(l) for m, l, _ in irreps)


def irreps_slices(irreps):
    slcs, off = [], 0
    for m, l, _ in irreps:
        d = m * ir_dim(l)
        slcs.append((off, off + d))
        off += d
    return slcs


def wigner_3j(l1, l2, l3):
    """Real-basis Wigner-3j (e3nn convention) for l <= 1."""
    key = (l1, l2, l3)
    if key == (0, 0, 0):
        return np.ones((1, 1, 1), np.float32)
    if key == (1, 1, 0):
        return (np.eye(3) / np.sqrt(3.0)).reshape(3, 3, 1).astype(np.float32)
    if key == (0, 1, 1):
        return (np.eye(3) / np.sqrt(3.0)).reshape(1, 3, 3).astype(np.float32)
    if key == (1, 0, 1):
        return (np.eye(3) / np.sqrt(3.0)).reshape(3, 1, 3).astype(np.float32)
    # TODO(synk): general o3.wigner_3j for l > 1 not reimplemented here.
    raise NotImplementedError(f"wigner_3j{key} not supported in this synthetic setup")


def tp_contains(l1, p1, l2, p2, l3, p3):
    return (abs(l1 - l2) <= l3 <= l1 + l2) and (p1 * p2 == p3)


def build_instructions(irreps_in, irreps_out):
    """Mirrors Expansion.get_expansion_path."""
    instructions, w3js = [], []
    for i, (mul_in, l_in, p_in) in enumerate(irreps_in):
        for j, (m1, l1, p1) in enumerate(irreps_out):
            for k, (m2, l2, p2) in enumerate(irreps_out):
                if tp_contains(l1, p1, l2, p2, l_in, p_in):
                    instructions.append((i, j, k, True, 1.0, (mul_in, m1, m2)))
                    w3js.append(wigner_3j(l1, l2, l_in))
    return instructions, w3js


def build_bilinear_matrices(irreps_block, irreps_out, instructions, w3js):
    """Fold the per-instruction einsum/Wigner-3j paths into fixed matrices."""
    D_in = irreps_dim(irreps_block)
    Dout = irreps_dim(irreps_out)
    Q = Dout * Dout
    blk_slices = irreps_slices(irreps_block)
    out_slices = irreps_slices(irreps_out)
    P = sum(int(np.prod(ins[-1])) for ins in instructions if ins[3])
    NB = sum(int(np.prod(ins[-1][1:])) for ins in instructions if ins[0] == 0)

    A = np.zeros((Q, P, D_in), np.float32)   # out_q <- weight_p * x_d
    B = np.zeros((Q, NB), np.float32)        # out_q <- bias_r
    fw, bi = 0, 0
    for ins, w3j in zip(instructions, w3js):
        i, j, k, _, _, (mul_in, mo1, mo2) = ins
        di, dj, dk = ir_dim(irreps_out[j][1]), ir_dim(irreps_out[k][1]), ir_dim(irreps_block[i][1])
        blk_start = blk_slices[i][0]
        row_off, col_off = out_slices[j][0], out_slices[k][0]
        for u in range(mo1):
            for v in range(mo2):
                for ii in range(di):
                    for jj in range(dj):
                        q = (row_off + u * di + ii) * Dout + (col_off + v * dj + jj)
                        for w in range(mul_in):
                            p = fw + w * mo1 * mo2 + u * mo2 + v
                            for kk in range(dk):
                                d = blk_start + w * dk + kk
                                A[q, p, d] += w3j[ii, jj, kk] / mul_in
                        if i == 0:
                            r = bi + u * mo2 + v
                            B[q, r] += float(w3j[ii, jj, :].sum()) / mul_in
        fw += mul_in * mo1 * mo2
        if i == 0:
            bi += mo1 * mo2

    # A2T[p, d*Q + q] = A[q, p, d]  ;  BT[r, q] = B[q, r]
    A2T = np.ascontiguousarray(np.transpose(A, (1, 2, 0)).reshape(P, D_in * Q))
    BT = np.ascontiguousarray(B.T)
    return A2T, BT, P, NB, D_in, Dout


def fold_params(mlp_params, A2T, BT, D_in, Dout, qhalf=QHALF, param_dtype=jnp.float32):
    """Setup-time algebraic folding (exact, matmul associativity):
      * concat the two MLP first layers -> one [node_dim, 2H] matmul + one SiLU
      * fold second layers into the fixed bilinear maps: W2w@A2T, b2w@A2T, W2b@BT, b2b@BT
      * pack TWO D_in blocks per 128-lane stripe (even d -> lanes 0..63, odd d ->
        lanes 64..127) so MXU columns and folded constants carry no zero-pad waste,
        plus one trailing 128-lane stripe for the folded bias map (rows H:)."""
    W1w, b1w, W2w, b2w, W1b, b1b, W2b, b2b = [np.asarray(p, np.float32) for p in mlp_params]
    Q = Dout * Dout
    # TODO(synk): Q > 64 would need one block per 128-lane stripe (previous layout).
    assert Q <= qhalf, "pair-packed layout assumes Dout^2 <= 64"
    H = W1w.shape[1]
    stripe = 2 * qhalf

    w1_full = np.concatenate([W1w, W1b], axis=1)                 # [node_dim, 2H]
    b1_full = np.concatenate([b1w, b1b], axis=1)                 # [1, 2H]

    A_w = (W2w @ A2T).reshape(H, D_in, Q)                        # [H, D_in, Q]
    c_w = (b2w @ A2T).reshape(1, D_in, Q)                        # [1, D_in, Q]
    A_b = W2b @ BT                                               # [H, Q]
    c_b = b2b @ BT                                               # [1, Q]

    d_even = D_in + (D_in % 2)
    d_pair = d_even // 2

    def pack_pairs(m):                                           # [R, D_in, Q] -> [R, d_pair*128]
        m = np.pad(m, ((0, 0), (0, d_even - D_in), (0, qhalf - Q)))
        return m.reshape(m.shape[0], d_pair, stripe).reshape(m.shape[0], d_pair * stripe)

    A_w, c_w = pack_pairs(A_w), pack_pairs(c_w)

    a_pack = np.zeros((2 * H, (d_pair + 1) * stripe), np.float32)
    b_pack = np.zeros((1, (d_pair + 1) * stripe), np.float32)
    a_pack[:H, :d_pair * stripe] = A_w                           # weight branch (rows :H)
    b_pack[:, :d_pair * stripe] = c_w
    bias_lo = d_pair * stripe
    a_pack[H:, bias_lo:bias_lo + Q] = A_b                        # bias branch (rows H:)
    b_pack[:, bias_lo:bias_lo + Q] = c_b

    # TODO(synk): param_dtype=jnp.bfloat16 is the v6e/v7x low-precision option; kept
    # float32 by default so the 5e-3 reference tolerance holds unconditionally.
    cast = lambda a: jnp.asarray(a, param_dtype)
    return cast(w1_full), cast(b1_full), cast(a_pack), cast(b_pack)


# ---------------------------- Pallas kernel ----------------------------
def expansion_kernel(x_ref, ne_ref, w1_ref, b1_ref, ap_ref, bp_ref, out_ref,
                     *, d_pair, qhalf, pair_chunk):
    stripe = 2 * qhalf                       # 128 lanes per packed stripe
    x = x_ref[...]                           # [TN, D_even]    (f32)
    ne = ne_ref[...]                         # [TN, node_dim]  (f32)
    tn = x.shape[0]

    # fused first layers of lin_weight / lin_bias: one matmul + one SiLU over 128 lanes
    w1 = w1_ref[...]
    h = jnp.dot(ne.astype(w1.dtype), w1, preferred_element_type=jnp.float32) + b1_ref[...]
    h = h * jax.nn.sigmoid(h)                # SiLU, [TN, 2*HIDDEN]
    hk = h.astype(ap_ref.dtype)

    # even/odd-d lane selector (hoisted; computed once per tile)
    lane = jax.lax.broadcasted_iota(jnp.int32, (tn, stripe), 1)
    lo_mask = lane < qhalf

    # bias stripe (lin_bias folded through BT) initializes the accumulator;
    # its upper 64 lanes are structurally zero.
    bias_lo = d_pair * stripe
    acc = jnp.dot(hk, ap_ref[:, bias_lo:bias_lo + stripe],
                  preferred_element_type=jnp.float32) + bp_ref[:, bias_lo:bias_lo + stripe]

    # packed path-weight stripes, chunked so the full [TN, d_pair*128] intermediate
    # never materializes (bounds vreg/VMEM pressure at large TN)
    for c0 in range(0, d_pair, pair_chunk):
        w = min(pair_chunk, d_pair - c0)
        lo, hi = c0 * stripe, (c0 + w) * stripe
        ch = jnp.dot(hk, ap_ref[:, lo:hi],
                     preferred_element_type=jnp.float32) + bp_ref[:, lo:hi]
        for c in range(w):                   # lane-aligned 128-wide FMA per d-pair
            d0 = 2 * (c0 + c)
            xe = jnp.broadcast_to(x[:, d0:d0 + 1], (tn, stripe))
            xo = jnp.broadcast_to(x[:, d0 + 1:d0 + 2], (tn, stripe))
            xm = jnp.where(lo_mask, xe, xo)
            acc = acc + xm * ch[:, c * stripe:(c + 1) * stripe]

    # fold the odd-d half-stripe (lanes 64..127) onto output lanes 0..63; the store
    # stays 128-lane dense (upper lanes carry a harmless duplicate, sliced off later).
    folded = acc + pltpu.roll(acc, shift=qhalf, axis=1)
    out_ref[...] = folded.astype(out_ref.dtype)


def expansion_pallas(x_in, node_embed, w1_full, b1_full, a_pack, b_pack, Dout,
                     *, tn=None, pair_chunk=4):
    N, D_in = x_in.shape
    node_dim = node_embed.shape[1]
    Q = Dout * Dout
    stripe = 2 * QHALF
    d_pair = a_pack.shape[1] // stripe - 1
    d_even = 2 * d_pair

    # pad D_in to even so every 128-lane stripe holds a full (even d, odd d) pair
    if d_even != D_in:
        x_in = jnp.pad(x_in, ((0, 0), (0, d_even - D_in)))

    # ---- row-tile selection: large tiles, but keep >= 2 grid steps for moderate N so
    #      both v7x TensorCores get work; pad the tail instead of silently dropping it.
    if tn is None:
        if N <= 16:
            tn = N
        elif N <= 1024:
            tn = N // 2
        else:
            tn = 512
    tn = max(8, min(int(tn), max(N, 8)))
    tn = ((tn + 7) // 8) * 8                       # sublane (8) alignment
    n_pad = ((N + tn - 1) // tn) * tn
    if n_pad != N:
        x_in = jnp.pad(x_in, ((0, n_pad - N), (0, 0)))
        node_embed = jnp.pad(node_embed, ((0, n_pad - N), (0, 0)))
    grid = (n_pad // tn,)

    # ---- explicit VMEM budget only when tiles get big (v7x physical VMEM is 64 MiB) ----
    const_bytes = sum(int(a.size) * a.dtype.itemsize
                      for a in (w1_full, b1_full, a_pack, b_pack))
    io_bytes = 4 * tn * (d_even + node_dim + stripe) * 2          # double-buffered tiles
    live_bytes = 4 * tn * (w1_full.shape[1] + (pair_chunk + 2) * stripe)
    est = 2 * const_bytes + io_bytes + live_bytes + (2 << 20)
    vmem_limit = None if est <= (24 << 20) else min(int(est), 56 << 20)

    def const_spec(a):
        return pl.BlockSpec(a.shape, lambda i: (0, 0))

    out_flat = pl.pallas_call(
        functools.partial(expansion_kernel, d_pair=d_pair, qhalf=QHALF,
                          pair_chunk=pair_chunk),
        out_shape=jax.ShapeDtypeStruct((n_pad, stripe), jnp.float32),
        grid_spec=pltpu.PrefetchScalarGridSpec(
            num_scalar_prefetch=0,
            grid=grid,
            in_specs=[
                pl.BlockSpec((tn, d_even), lambda i: (i, 0)),
                pl.BlockSpec((tn, node_dim), lambda i: (i, 0)),
                const_spec(w1_full), const_spec(b1_full),
                const_spec(a_pack), const_spec(b_pack),
            ],
            out_specs=pl.BlockSpec((tn, stripe), lambda i: (i, 0)),
        ),
        compiler_params=pltpu.CompilerParams(
            dimension_semantics=("parallel",),
            vmem_limit_bytes=vmem_limit),
    )(x_in, node_embed, w1_full, b1_full, a_pack, b_pack)

    return out_flat[:N, :Q].reshape(N, Dout, Dout)


# ------------------------- pure-JAX reference --------------------------
def expansion_ref(x_in, node_embed, mlp_params, instructions, w3js, irreps_block, irreps_out):
    W1w, b1w, W2w, b2w, W1b, b1b, W2b, b2b = mlp_params

    def mlp(x, w1, b1, w2, b2):
        h = x @ w1 + b1
        h = h * jax.nn.sigmoid(h)
        return h @ w2 + b2

    weight = mlp(node_embed, W1w, b1w, W2w, b2w)
    bias = mlp(node_embed, W1b, b1b, W2b, b2b)
    N = x_in.shape[0]
    blk_slices = irreps_slices(irreps_block)
    x_in_s = [x_in[:, s:e].reshape(N, irreps_block[i][0], ir_dim(irreps_block[i][1]))
              for i, (s, e) in enumerate(blk_slices)]
    outputs = {}
    fw, bi = 0, 0
    for ins, w3j in zip(instructions, w3js):
        i, j, k, _, _, (mul_in, mo1, mo2) = ins
        x1 = x_in_s[i]
        w = weight[:, fw:fw + mul_in * mo1 * mo2].reshape(N, mul_in, mo1, mo2)
        result = jnp.einsum('bwuv,bwk->buvk', w, x1)
        if i == 0:
            b = bias[:, bi:bi + mo1 * mo2].reshape(N, mo1, mo2)
            bi += mo1 * mo2
            result = result + b[..., None]
        result = jnp.einsum('ijk,buvk->buivj', jnp.asarray(w3j), result) / mul_in
        fw += mul_in * mo1 * mo2
        od1 = irreps_out[j][0] * ir_dim(irreps_out[j][1])
        od2 = irreps_out[k][0] * ir_dim(irreps_out[k][1])
        result = result.reshape(N, od1, od2)
        outputs[(j, k)] = outputs.get((j, k), 0.0) + result
    rows = []
    for i in range(len(irreps_out)):
        blocks = []
        for j in range(len(irreps_out)):
            if (i, j) not in outputs:
                odi = irreps_out[i][0] * ir_dim(irreps_out[i][1])
                odj = irreps_out[j][0] * ir_dim(irreps_out[j][1])
                blocks.append(jnp.zeros((N, odi, odj), x_in.dtype))
            else:
                blocks.append(outputs[(i, j)])
        rows.append(jnp.concatenate(blocks, axis=-1))
    return jnp.concatenate(rows, axis=-2)


# -------------------------------- main ---------------------------------
if __name__ == "__main__":
    instructions, w3js = build_instructions(IRREPS_BLOCK, IRREPS_OUT)
    A2T_np, BT_np, P, NB, D_in, Dout = build_bilinear_matrices(
        IRREPS_BLOCK, IRREPS_OUT, instructions, w3js)

    N = 64
    key = jax.random.PRNGKey(0)
    ks = jax.random.split(key, 12)
    W1w = jax.random.normal(ks[0], (NODE_DIM, HIDDEN), jnp.float32) * 0.1
    b1w = jax.random.normal(ks[1], (1, HIDDEN), jnp.float32) * 0.1
    W2w = jax.random.normal(ks[2], (HIDDEN, P), jnp.float32) * 0.1
    b2w = jax.random.normal(ks[3], (1, P), jnp.float32) * 0.1
    W1b = jax.random.normal(ks[4], (NODE_DIM, HIDDEN), jnp.float32) * 0.1
    b1b = jax.random.normal(ks[5], (1, HIDDEN), jnp.float32) * 0.1
    W2b = jax.random.normal(ks[6], (HIDDEN, NB), jnp.float32) * 0.1
    b2b = jax.random.normal(ks[7], (1, NB), jnp.float32) * 0.1
    mlp_params = (W1w, b1w, W2w, b2w, W1b, b1b, W2b, b2b)

    x_in = jax.random.normal(ks[8], (N, D_in), jnp.float32)
    node_embed = jax.random.normal(ks[9], (N, NODE_DIM), jnp.float32)

    # setup-time folding of MLP second layers + Wigner-3j bilinear maps (pair-packed)
    w1_full, b1_full, a_pack, b_pack = fold_params(
        mlp_params, A2T_np, BT_np, D_in, Dout, param_dtype=jnp.float32)

    out = expansion_pallas(x_in, node_embed, w1_full, b1_full, a_pack, b_pack, Dout)
    out = jax.block_until_ready(out)
    assert out.shape == (N, Dout, Dout)

    with jax.default_matmul_precision("highest"):
        ref = expansion_ref(x_in, node_embed, mlp_params, instructions, w3js,
                            IRREPS_BLOCK, IRREPS_OUT)
    if not jnp.allclose(out, ref, atol=5e-3, rtol=5e-3):
        raise AssertionError(
            f"mismatch: max abs err {float(jnp.max(jnp.abs(out - ref)))}")
    print("KERNEL_OK")
</pallas_src>

<mosaic_0001>
module attributes {stable_mosaic.version = 11 : i64} {
  func.func @expansion_kernel(%arg0: i32, %arg1: memref<32x16xf32, #tpu.memory_space<vmem>>, %arg2: memref<32x32xf32, #tpu.memory_space<vmem>>, %arg3: memref<32x128xf32, #tpu.memory_space<vmem>>, %arg4: memref<1x128xf32, #tpu.memory_space<vmem>>, %arg5: memref<128x1152xf32, #tpu.memory_space<vmem>>, %arg6: memref<1x1152xf32, #tpu.memory_space<vmem>>, %arg7: memref<32x128xf32, #tpu.memory_space<vmem>>) attributes {dimension_semantics = [#tpu.dimension_semantics<parallel>], iteration_bounds = array<i64: 2>, scalar_prefetch = 0 : i64, scratch_operands = 0 : i64, tpu.core_type = #tpu.core_type<tc>, window_params = [{transform_indices = @transform_0, window_bounds = array<i64: 32, 16>}, {transform_indices = @transform_1, window_bounds = array<i64: 32, 32>}, {pipeline_mode = #tpu.pipeline_mode<synchronous>, transform_indices = @transform_2, window_bounds = array<i64: 32, 128>}, {pipeline_mode = #tpu.pipeline_mode<synchronous>, transform_indices = @transform_3, window_bounds = array<i64: 1, 128>}, {pipeline_mode = #tpu.pipeline_mode<synchronous>, transform_indices = @transform_4, window_bounds = array<i64: 128, 1152>}, {pipeline_mode = #tpu.pipeline_mode<synchronous>, transform_indices = @transform_5, window_bounds = array<i64: 1, 1152>}, {transform_indices = @transform_6, window_bounds = array<i64: 32, 128>}]} {
    %c0 = arith.constant 0 : index
    %c0_0 = arith.constant 0 : index
    %0 = vector.load %arg1[%c0, %c0_0] : memref<32x16xf32, #tpu.memory_space<vmem>>, vector<32x16xf32>
    %c0_1 = arith.constant 0 : index
    %c0_2 = arith.constant 0 : index
    %1 = vector.load %arg2[%c0_1, %c0_2] : memref<32x32xf32, #tpu.memory_space<vmem>>, vector<32x32xf32>
    %c0_3 = arith.constant 0 : index
    %c0_4 = arith.constant 0 : index
    %2 = vector.load %arg3[%c0_3, %c0_4] : memref<32x128xf32, #tpu.memory_space<vmem>>, vector<32x128xf32>
    %cst = arith.constant dense<0.000000e+00> : vector<32x128xf32>
    %3 = tpu.matmul %1, %2, %cst {dimension_numbers = #tpu.dot_dimension_numbers<[1], [0], [0], [1], [0, 0, 1, 1], [], []>} : vector<32x32xf32>, vector<32x128xf32>, vector<32x128xf32> -> vector<32x128xf32>
    %c0_5 = arith.constant 0 : index
    %c0_6 = arith.constant 0 : index
    %4 = vector.load %arg4[%c0_5, %c0_6] : memref<1x128xf32, #tpu.memory_space<vmem>>, vector<1x128xf32>
    %5 = vector.broadcast %4 : vector<1x128xf32> to vector<32x128xf32>
    %6 = arith.addf %3, %5 : vector<32x128xf32>
    %7 = arith.negf %6 : vector<32x128xf32>
    %8 = math.exp %7 : vector<32x128xf32>
    %cst_7 = arith.constant 1.000000e+00 : f32
    %9 = vector.broadcast %cst_7 : f32 to vector<32x128xf32>
    %10 = arith.addf %9, %8 : vector<32x128xf32>
    %11 = arith.divf %9, %10 : vector<32x128xf32>
    %12 = arith.mulf %6, %11 : vector<32x128xf32>
    %13 = tpu.iota {dimensions = array<i32: 1>} : vector<32x128xi32>
    %c64_i32 = arith.constant 64 : i32
    %14 = vector.broadcast %c64_i32 : i32 to vector<32x128xi32>
    %15 = arith.cmpi slt, %13, %14 : vector<32x128xi32>
    %c0_8 = arith.constant 0 : index
    %c1024 = arith.constant 1024 : index
    %16 = vector.load %arg5[%c0_8, %c1024] : memref<128x1152xf32, #tpu.memory_space<vmem>>, vector<128x128xf32>
    %cst_9 = arith.constant dense<0.000000e+00> : vector<32x128xf32>
    %17 = tpu.matmul %12, %16, %cst_9 {dimension_numbers = #tpu.dot_dimension_numbers<[1], [0], [0], [1], [0, 0, 1, 1], [], []>} : vector<32x128xf32>, vector<128x128xf32>, vector<32x128xf32> -> vector<32x128xf32>
    %c0_10 = arith.constant 0 : index
    %c1024_11 = arith.constant 1024 : index
    %18 = vector.load %arg6[%c0_10, %c1024_11] : memref<1x1152xf32, #tpu.memory_space<vmem>>, vector<1x128xf32>
    %19 = vector.broadcast %18 : vector<1x128xf32> to vector<32x128xf32>
    %20 = arith.addf %17, %19 : vector<32x128xf32>
    %c0_12 = arith.constant 0 : index
    %c0_13 = arith.constant 0 : index
    %21 = vector.load %arg5[%c0_12, %c0_13] : memref<128x1152xf32, #tpu.memory_space<vmem>>, vector<128x512xf32>
    %cst_14 = arith.constant dense<0.000000e+00> : vector<32x512xf32>
    %22 = tpu.matmul %12, %21, %cst_14 {dimension_numbers = #tpu.dot_dimension_numbers<[1], [0], [0], [1], [0, 0, 1, 1], [], []>} : vector<32x128xf32>, vector<128x512xf32>, vector<32x512xf32> -> vector<32x512xf32>
    %c0_15 = arith.constant 0 : index
    %c0_16 = arith.constant 0 : index
    %23 = vector.load %arg6[%c0_15, %c0_16] : memref<1x1152xf32, #tpu.memory_space<vmem>>, vector<1x512xf32>
    %24 = vector.broadcast %23 : vector<1x512xf32> to vector<32x512xf32>
    %25 = arith.addf %22, %24 : vector<32x512xf32>
    %26 = vector.extract_strided_slice %0 {offsets = [0, 0], sizes = [32, 1], strides = [1, 1]} : vector<32x16xf32> to vector<32x1xf32>
    %27 = vector.shape_cast %26 : vector<32x1xf32> to vector<32x1xf32>
    %28 = vector.broadcast %27 : vector<32x1xf32> to vector<32x128xf32>
    %29 = vector.extract_strided_slice %0 {offsets = [0, 1], sizes = [32, 1], strides = [1, 1]} : vector<32x16xf32> to vector<32x1xf32>
    %30 = vector.shape_cast %29 : vector<32x1xf32> to vector<32x1xf32>
    %31 = vector.broadcast %30 : vector<32x1xf32> to vector<32x128xf32>
    %32 = arith.select %15, %28, %31 : vector<32x128xi1>, vector<32x128xf32>
    %33 = vector.extract_strided_slice %25 {offsets = [0, 0], sizes = [32, 128], strides = [1, 1]} : vector<32x512xf32> to vector<32x128xf32>
    %34 = arith.mulf %32, %33 : vector<32x128xf32>
    %35 = arith.addf %20, %34 : vector<32x128xf32>
    %36 = vector.extract_strided_slice %0 {offsets = [0, 2], sizes = [32, 1], strides = [1, 1]} : vector<32x16xf32> to vector<32x1xf32>
    %37 = vector.shape_cast %36 : vector<32x1xf32> to vector<32x1xf32>
    %38 = vector.broadcast %37 : vector<32x1xf32> to vector<32x128xf32>
    %39 = vector.extract_strided_slice %0 {offsets = [0, 3], sizes = [32, 1], strides = [1, 1]} : vector<32x16xf32> to vector<32x1xf32>
    %40 = vector.shape_cast %39 : vector<32x1xf32> to vector<32x1xf32>
    %41 = vector.broadcast %40 : vector<32x1xf32> to vector<32x128xf32>
    %42 = arith.select %15, %38, %41 : vector<32x128xi1>, vector<32x128xf32>
    %43 = vector.extract_strided_slice %25 {offsets = [0, 128], sizes = [32, 128], strides = [1, 1]} : vector<32x512xf32> to vector<32x128xf32>
    %44 = arith.mulf %42, %43 : vector<32x128xf32>
    %45 = arith.addf %35, %44 : vector<32x128xf32>
    %46 = vector.extract_strided_slice %0 {offsets = [0, 4], sizes = [32, 1], strides = [1, 1]} : vector<32x16xf32> to vector<32x1xf32>
    %47 = vector.shape_cast %46 : vector<32x1xf32> to vector<32x1xf32>
    %48 = vector.broadcast %47 : vector<32x1xf32> to vector<32x128xf32>
    %49 = vector.extract_strided_slice %0 {offsets = [0, 5], sizes = [32, 1], strides = [1, 1]} : vector<32x16xf32> to vector<32x1xf32>
    %50 = vector.shape_cast %49 : vector<32x1xf32> to vector<32x1xf32>
    %51 = vector.broadcast %50 : vector<32x1xf32> to vector<32x128xf32>
    %52 = arith.select %15, %48, %51 : vector<32x128xi1>, vector<32x128xf32>
    %53 = vector.extract_strided_slice %25 {offsets = [0, 256], sizes = [32, 128], strides = [1, 1]} : vector<32x512xf32> to vector<32x128xf32>
    %54 = arith.mulf %52, %53 : vector<32x128xf32>
    %55 = arith.addf %45, %54 : vector<32x128xf32>
    %56 = vector.extract_strided_slice %0 {offsets = [0, 6], sizes = [32, 1], strides = [1, 1]} : vector<32x16xf32> to vector<32x1xf32>
    %57 = vector.shape_cast %56 : vector<32x1xf32> to vector<32x1xf32>
    %58 = vector.broadcast %57 : vector<32x1xf32> to vector<32x128xf32>
    %59 = vector.extract_strided_slice %0 {offsets = [0, 7], sizes = [32, 1], strides = [1, 1]} : vector<32x16xf32> to vector<32x1xf32>
    %60 = vector.shape_cast %59 : vector<32x1xf32> to vector<32x1xf32>
    %61 = vector.broadcast %60 : vector<32x1xf32> to vector<32x128xf32>
    %62 = arith.select %15, %58, %61 : vector<32x128xi1>, vector<32x128xf32>
    %63 = vector.extract_strided_slice %25 {offsets = [0, 384], sizes = [32, 128], strides = [1, 1]} : vector<32x512xf32> to vector<32x128xf32>
    %64 = arith.mulf %62, %63 : vector<32x128xf32>
    %65 = arith.addf %55, %64 : vector<32x128xf32>
    %c0_17 = arith.constant 0 : index
    %c512 = arith.constant 512 : index
    %66 = vector.load %arg5[%c0_17, %c512] : memref<128x1152xf32, #tpu.memory_space<vmem>>, vector<128x512xf32>
    %cst_18 = arith.constant dense<0.000000e+00> : vector<32x512xf32>
    %67 = tpu.matmul %12, %66, %cst_18 {dimension_numbers = #tpu.dot_dimension_numbers<[1], [0], [0], [1], [0, 0, 1, 1], [], []>} : vector<32x128xf32>, vector<128x512xf32>, vector<32x512xf32> -> vector<32x512xf32>
    %c0_19 = arith.constant 0 : index
    %c512_20 = arith.constant 512 : index
    %68 = vector.load %arg6[%c0_19, %c512_20] : memref<1x1152xf32, #tpu.memory_space<vmem>>, vector<1x512xf32>
    %69 = vector.broadcast %68 : vector<1x512xf32> to vector<32x512xf32>
    %70 = arith.addf %67, %69 : vector<32x512xf32>
    %71 = vector.extract_strided_slice %0 {offsets = [0, 8], sizes = [32, 1], strides = [1, 1]} : vector<32x16xf32> to vector<32x1xf32>
    %72 = vector.shape_cast %71 : vector<32x1xf32> to vector<32x1xf32>
    %73 = vector.broadcast %72 : vector<32x1xf32> to vector<32x128xf32>
    %74 = vector.extract_strided_slice %0 {offsets = [0, 9], sizes = [32, 1], strides = [1, 1]} : vector<32x16xf32> to vector<32x1xf32>
    %75 = vector.shape_cast %74 : vector<32x1xf32> to vector<32x1xf32>
    %76 = vector.broadcast %75 : vector<32x1xf32> to vector<32x128xf32>
    %77 = arith.select %15, %73, %76 : vector<32x128xi1>, vector<32x128xf32>
    %78 = vector.extract_strided_slice %70 {offsets = [0, 0], sizes = [32, 128], strides = [1, 1]} : vector<32x512xf32> to vector<32x128xf32>
    %79 = arith.mulf %77, %78 : vector<32x128xf32>
    %80 = arith.addf %65, %79 : vector<32x128xf32>
    %81 = vector.extract_strided_slice %0 {offsets = [0, 10], sizes = [32, 1], strides = [1, 1]} : vector<32x16xf32> to vector<32x1xf32>
    %82 = vector.shape_cast %81 : vector<32x1xf32> to vector<32x1xf32>
    %83 = vector.broadcast %82 : vector<32x1xf32> to vector<32x128xf32>
    %84 = vector.extract_strided_slice %0 {offsets = [0, 11], sizes = [32, 1], strides = [1, 1]} : vector<32x16xf32> to vector<32x1xf32>
    %85 = vector.shape_cast %84 : vector<32x1xf32> to vector<32x1xf32>
    %86 = vector.broadcast %85 : vector<32x1xf32> to vector<32x128xf32>
    %87 = arith.select %15, %83, %86 : vector<32x128xi1>, vector<32x128xf32>
    %88 = vector.extract_strided_slice %70 {offsets = [0, 128], sizes = [32, 128], strides = [1, 1]} : vector<32x512xf32> to vector<32x128xf32>
    %89 = arith.mulf %87, %88 : vector<32x128xf32>
    %90 = arith.addf %80, %89 : vector<32x128xf32>
    %91 = vector.extract_strided_slice %0 {offsets = [0, 12], sizes = [32, 1], strides = [1, 1]} : vector<32x16xf32> to vector<32x1xf32>
    %92 = vector.shape_cast %91 : vector<32x1xf32> to vector<32x1xf32>
    %93 = vector.broadcast %92 : vector<32x1xf32> to vector<32x128xf32>
    %94 = vector.extract_strided_slice %0 {offsets = [0, 13], sizes = [32, 1], strides = [1, 1]} : vector<32x16xf32> to vector<32x1xf32>
    %95 = vector.shape_cast %94 : vector<32x1xf32> to vector<32x1xf32>
    %96 = vector.broadcast %95 : vector<32x1xf32> to vector<32x128xf32>
    %97 = arith.select %15, %93, %96 : vector<32x128xi1>, vector<32x128xf32>
    %98 = vector.extract_strided_slice %70 {offsets = [0, 256], sizes = [32, 128], strides = [1, 1]} : vector<32x512xf32> to vector<32x128xf32>
    %99 = arith.mulf %97, %98 : vector<32x128xf32>
    %100 = arith.addf %90, %99 : vector<32x128xf32>
    %101 = vector.extract_strided_slice %0 {offsets = [0, 14], sizes = [32, 1], strides = [1, 1]} : vector<32x16xf32> to vector<32x1xf32>
    %102 = vector.shape_cast %101 : vector<32x1xf32> to vector<32x1xf32>
    %103 = vector.broadcast %102 : vector<32x1xf32> to vector<32x128xf32>
    %104 = vector.extract_strided_slice %0 {offsets = [0, 15], sizes = [32, 1], strides = [1, 1]} : vector<32x16xf32> to vector<32x1xf32>
    %105 = vector.shape_cast %104 : vector<32x1xf32> to vector<32x1xf32>
    %106 = vector.broadcast %105 : vector<32x1xf32> to vector<32x128xf32>
    %107 = arith.select %15, %103, %106 : vector<32x128xi1>, vector<32x128xf32>
    %108 = vector.extract_strided_slice %70 {offsets = [0, 384], sizes = [32, 128], strides = [1, 1]} : vector<32x512xf32> to vector<32x128xf32>
    %109 = arith.mulf %107, %108 : vector<32x128xf32>
    %110 = arith.addf %100, %109 : vector<32x128xf32>
    %c64_i32_21 = arith.constant 64 : i32
    %111 = tpu.dynamic_rotate %110 by %c64_i32_21 dim 1 : vector<32x128xf32>, i32 -> vector<32x128xf32>
    %112 = arith.addf %110, %111 : vector<32x128xf32>
    %c0_22 = arith.constant 0 : index
    %c0_23 = arith.constant 0 : index
    %113 = vector.load %arg7[%c0_22, %c0_23] : memref<32x128xf32, #tpu.memory_space<vmem>>, vector<32x128xf32>
    tpu.vector_store %arg7[%c0_22, %c0_23], %112 {strides = array<i32>} : memref<32x128xf32, #tpu.memory_space<vmem>>, vector<32x128xf32>,
    return
  }
  func.func @transform_0(%arg0: i32) -> (i32, i32) {
    %c0_i32 = arith.constant 0 : i32
    %c0_i32_0 = arith.constant 0 : i32
    return %arg0, %c0_i32 : i32, i32
  }
  func.func @transform_1(%arg0: i32) -> (i32, i32) {
    %c0_i32 = arith.constant 0 : i32
    %c0_i32_0 = arith.constant 0 : i32
    return %arg0, %c0_i32 : i32, i32
  }
  func.func @transform_2(%arg0: i32) -> (i32, i32) {
    %c0_i32 = arith.constant 0 : i32
    %c0_i32_0 = arith.constant 0 : i32
    %c0_i32_1 = arith.constant 0 : i32
    return %c0_i32, %c0_i32_0 : i32, i32
  }
  func.func @transform_3(%arg0: i32) -> (i32, i32) {
    %c0_i32 = arith.constant 0 : i32
    %c0_i32_0 = arith.constant 0 : i32
    %c0_i32_1 = arith.constant 0 : i32
    return %c0_i32, %c0_i32_0 : i32, i32
  }
  func.func @transform_4(%arg0: i32) -> (i32, i32) {
    %c0_i32 = arith.constant 0 : i32
    %c0_i32_0 = arith.constant 0 : i32
    %c0_i32_1 = arith.constant 0 : i32
    return %c0_i32, %c0_i32_0 : i32, i32
  }
  func.func @transform_5(%arg0: i32) -> (i32, i32) {
    %c0_i32 = arith.constant 0 : i32
    %c0_i32_0 = arith.constant 0 : i32
    %c0_i32_1 = arith.constant 0 : i32
    return %c0_i32, %c0_i32_0 : i32, i32
  }
  func.func @transform_6(%arg0: i32) -> (i32, i32) {
    %c0_i32 = arith.constant 0 : i32
    %c0_i32_0 = arith.constant 0 : i32
    return %arg0, %c0_i32 : i32, i32
  }
}

</mosaic_0001>

<bundles_post_ra>
// kernel: tpu_custom_call.1
= control target key start
LH: loop header
LB: loop body
LE: loop exit
PB: predicated region body
PF: predicated region fallthrough
CT: control target
= control target key end

     0   :  { %11 = vsyncpa [#allocation3], 0  ;;  %s2683_s0 = inlined_call_operand.vmem [shape: f32[64,16], index: 0, kind: input, shape index: {}]   ;;  %s2684_s1 = inlined_call_operand.vmem [shape: f32[64,32], index: 1, kind: input, shape index: {}]   ;;  %s2685_s2 = inlined_call_operand.vmem [shape: f32[32,128], index: 2, kind: input, shape index: {}]   ;;  %s2686_s3 = inlined_call_operand.vmem [shape: f32[1,128], index: 3, kind: input, shape index: {}]   ;;  %s2687_s4 = inlined_call_operand.hbm [shape: f32[128,1152], index: 4, kind: input, shape index: {}]   ;;  %s2688_s5 = inlined_call_operand.vmem [shape: f32[1,1152], index: 5, kind: input, shape index: {}]   ;;  %s2689_s6 = inlined_call_operand.hbm [shape: f32[64,128], index: 6, kind: output, shape index: {}]  }
   0x1   :  { %12 = vsyncpa [#allocation4], 0 }
   0x2   :  { %14 = vsyncpa [#allocation4 + $0x1], 0  ;;  %s2112_s21 = smov 0   ;;  %s2114_s22 = smov 0  }
   0x3   :  { %s2116_s23 = smov 0   ;;  %s2118_s24 = smov 0  }
   0x4 LB: > { %s2133_s25 = sadd.s32 4294967295, %s2051_s24   ;;  %s1546_s26 = sadd.s32 4294967294, %s2051_s24   ;;  %s2051_s24 = sphi %s2118_s24, %s2705_s24   ;;  %s2047_s23 = sphi %s2116_s23, %s2704_s23   ;;  %s2043_s22 = sphi %s2114_s22, %s2703_s22   ;;  %s2039_s21 = sphi %s2112_s21, %s2702_s21  }
   0x5   : > { %s2137_s27 = sadd.s32 1, %s2051_s24   ;;  %s163_s28 = sadd.s32 1, %s2047_s23 }
   0x6   : > { %s160_s29 = ssub.s32 %s2051_s24, %s2137_s27  ;;  %p173_p0 = scmp.ne.s32.totalorder %s2047_s23, %s2043_s22 }
   0x7   : > { %p161_p1 = scmp.eq.s32.totalorder %s160_s29, 0  ;;  %p174_p2 = scmp.eq.s32.totalorder %s2133_s25, 1 }
   0x8   : > { %p179_p3 = scmp.ne.s32.totalorder %s2043_s22, %s2039_s21  ;;  %p180_p4 = scmp.eq.s32.totalorder %s1546_s26, 1 }
   0x9   : > { %s2148_s30 = scalar_select %p161_p1, %s2047_s23, %s163_s28  }
   0xa   : > { %p2150_p5 = por %p174_p2, %p173_p0  ;;  %p2154_p6 = por %p180_p4, %p179_p3 }
   0xb   : > { %p1547_p7 = scmp.ge.s32.totalorder %s2051_s24, 1  ;;  %p187_p8 = scmp.lt.s32.totalorder %s2051_s24, 3 }
   0xc   : > { %s2693_s7 = scalar_select %p2150_p5, 1, 0 }
   0xd   : > { %s2694_s8 = scalar_select %p2154_p6, 1, 0 }
   0xe   : > { %p2690_p9 = scmp.eq.s32.totalorder %s2133_s25, 0  ;;  %p2161_p10 = pnand %p1547_p7, %p187_p8 }
   0xf   : > { %s2053_s10 = smov [#allocation2]   ;;  %s1957_s15 = scalar_lea.hbm %s2687_s4, 18432 }
  0x10   : > { %s2695_s9 = scalar_select %p2161_p10, 1, 0 }
  0x11   : > { %s205_s11 = sshll.u32 %s2053_s10, 4  ;;  %p1843_p11 = pneg %p2161_p10  ;;  %s206_s11 = int_to_ptr.vmem [resolvable:$true] %s205_s11 }
  0x12   : > { %p1958_p13 = scmp.ne.s32.totalorder %s2687_s4, %s1957_s15  ;;  %p1964_p3 = scmp.lt.u32.totalorder %s1957_s15, %s2687_s4 }
  0x13   : > { %p2169_p12 = pnand %p2690_p9, %p1843_p11 }
  0x15   : > { %p1959_p0 = pneg %p2169_p12 }
  0x17   : > { %p1960_p1 = pnand %p1959_p0, %p1958_p13 }
  0x19   : > { %p1961_p2 = pneg %p1960_p1 }
  0x1b   : > { %p1966_p4 = pnand %p1964_p3, %p1961_p2 }
  0x1d   : > { %1969 = shalt.err (!%p1966_p4)
}
  0x1e   : > { %s1970_s20 = scalar_lea.vmem %s206_s11, 18432  ;;  %p1978_p9 = scmp.lt.s32.totalorder %s206_s11, %s206_s11 }
  0x1f   : > { %p1971_p7 = scmp.ne.s32.totalorder %s206_s11, %s1970_s20  ;;  %p1979_p6 = scmp.lt.s32.totalorder %s1970_s20, %s1970_s20 }
  0x21   : > { %p1973_p8 = pnand %p1971_p7, %p1959_p0  ;;  %p1980_p5 = por %p1979_p6, %p1978_p9 }
  0x23   : > { %p1974_p11 = pneg %p1973_p8 }
  0x25   : > { %p1981_p10 = pnand %p1980_p5, %p1974_p11 }
  0x27   : > { %1984 = shalt.err (!%p1981_p10)
}
  0x28   : > { %s2054_s26 = smov 1152   ;;  %s2055_s28 = smov 72  }
  0x29   : > { %1846 = dma.hbm_to_vmem [thread:$0]  (!%p2169_p12), %s2687_s4, 18432, %s206_s11, [#allocation3], %s2054_s26, %s2054_s26, %s2055_s28  }
  0x2a   : > { %p2697_p13 = scmp.ne.s32.totalorder %s2695_s9, 0 }
  0x2b   : > { %p2698_p1 = scmp.eq.s32.totalorder (!%p2697_p13), %s2133_s25, 0 }
  0x2c   : > { %242 = sbr.rel (%p2697_p13) target bundleno = 731 (0x2db), region = 44 }
  0x33   : > { %2030 = dma.done.wait (%p2698_p1), [#allocation3], 18432   ;;  %p2699_p0 = pmov %p2698_p1 }
  0x34   : > { %s1553_s13 = sshll.u32 %s2133_s25, 2  ;;  %v298_v0 = vld [vmem:[%s2685_s2] sm:$0xff]  ;;  %v299_v1 = vld [vmem:[%s2685_s2 + $0x8] sm:$0xff]  ;;  %v300_v2 = vld [vmem:[%s2685_s2 + $0x10] sm:$0xff]  ;;  %vm309_vm0 = vcmask 261120   ;;  %v2056_v36 = vmov 0  }
  0x35   : > { %2032 = vsyncadd (%p2699_p0), [#allocation3], 4294948864  ;;  %p278_p5 = scmp.lt.s32.totalorder %s1553_s13, 7  ;;  %v1653_v3 = vpack.c.bf16 %v299_v1, %v298_v0  ;;  %v301_v4 = vld [vmem:[%s2685_s2 + $0x18] sm:$0xff]  ;;  %v547_v7 = vld [vmem:[#allocation2 + $0x8] sm:$0xff]  ;;  %1910 = vset.pattern.permute.xlu1 %v2056_v36  ;;  %1909 = vset.pattern.permute.xlu0 %v2056_v36  ;;  %v2057_v59 = vmov 1  }
  0x36   : > { %v1657_v5 = vpack.c.bf16 %v301_v4, %v300_v2  ;;  %v551_v8 = vld [vmem:[#allocation2 + $0x50] sm:$0xff]  ;;  %v438_v13 = vld [vmem:[#allocation2 + $0x40] sm:$0xff]  ;;  %v439_v14 = vld [vmem:[#allocation2 + $0x88] sm:$0xff]  ;;  %v2062_v36 = vmov 5   ;;  %s2073_s19 = smov 64   ;;  %s274_s20 = sand.u32 1, %s2043_s22  }
  0x37   : > { %s2707_s13 = smov (!%p278_p5, %s1553_s13), 7  ;;  %1654 = vmatprep.subr.bf16.mxu0 %v1653_v3  ;;  %v1693_v9 = vpack.c.bf16 %v551_v8, %v547_v7  ;;  %v546_v15 = vld [vmem:[#allocation2] sm:$0xff]  ;;  %v1661_v16 = vpack.c.bf16 %v439_v14, %v438_v13  ;;  %v550_v17 = vld [vmem:[#allocation2 + $0x48] sm:$0xff]  ;;  %v555_v19 = vld [vmem:[#allocation2 + $0x98] sm:$0xff]  ;;  %s1552_s26 = sshll.u32 %s274_s20, 5 }
  0x38   : > { %s1554_s12 = sshll.u32 %s2707_s13, 3  ;;  %1656 = vmatpush3.bf16.msra.mxu0 %v1653_v3  ;;  %v1695_v18 = vpack.c.bf16 %v550_v17, %v546_v15  ;;  %v559_v20 = vld [vmem:[#allocation2 + $0xe0] sm:$0xff]  ;;  %v440_v22 = vld [vmem:[#allocation2 + $0xd0] sm:$0xff]  ;;  %v441_v23 = vld [vmem:[#allocation2 + $0x118] sm:$0xff]  ;;  %v2058_v15 = vmov 2   ;;  %s276_s28 = scalar_lea.vmem [#allocation5], %s1552_s26 }
  0x39   : > { %s287_s9 = scalar_lea.vmem %s2684_s1, %s1554_s12  ;;  %1658 = vmatprep.subr.bf16.mxu0 %v1657_v5  ;;  %1662 = vmatprep.subr.bf16.mxu1 %v1661_v16  ;;  %s2225_s14 = scalar_lea.vmem %s2683_s0, %s1554_s12  ;;  %v1697_v21 = vpack.c.bf16 %v559_v20, %v555_v19  ;;  %v554_v24 = vld [vmem:[#allocation2 + $0x90] sm:$0xff]  ;;  %v1665_v25 = vpack.c.bf16 %v441_v23, %v440_v22  ;;  %v558_v26 = vld [vmem:[#allocation2 + $0xd8] sm:$0xff]  ;;  %v563_v30 = vld [vmem:[#allocation2 + $0x128] sm:$0xff] }
  0x3a   : > { %v294_v6 = vld [vmem:[%s287_s9] sm:$0xff]  ;;  %v295_v10 = vld [vmem:[%s287_s9 + $0x8] sm:$0xff]  ;;  %v296_v11 = vld [vmem:[%s287_s9 + $0x10] sm:$0xff]  ;;  %1664 = vmatpush3.bf16.msra.mxu1 %v1661_v16  ;;  %v1699_v28 = vpack.c.bf16 %v558_v26, %v554_v24  ;;  %s1460_s29 = sshll.u32 %s276_s28, 4  ;;  %s1572_s10 = sshll.u32 %s2133_s25, 9  ;;  %s2635_s29 = int_to_ptr.vmem [resolvable:$true] %s1460_s29 }
  0x3b   : > { %1609 = vmatprep.mubr.msk.f32.mxu0 %vm309_vm0, %v294_v6  ;;  %v297_v12 = vld [vmem:[%s287_s9 + $0x18] sm:$0xff]  ;;  %v2228_v27 = vld [vmem:[%s2225_s14] sm:$0xff]  ;;  %v2231_v29 = vld [vmem:[%s2225_s14 + $0x10] sm:$0xff]  ;;  %1666 = vmatprep.subr.bf16.mxu1 %v1665_v25  ;;  %s2640_s12 = scalar_lea.hbm %s2689_s6, %s1572_s10  ;;  %s2642_s11 = scalar_lea.sflag [#allocation4], %s274_s20 }
  0x3c   : > { %1660 = vmatpush3.bf16.msra.mxu0 %v1657_v5  ;;  %v567_v31 = vld [vmem:[#allocation2 + $0x170] sm:$0xff]  ;;  %v442_v33 = vld [vmem:[#allocation2 + $0x160] sm:$0xff]  ;;  %v443_v34 = vld [vmem:[#allocation2 + $0x1a8] sm:$0xff]  ;;  %822 = vperm.xlu1 %1910, %v2231_v29   ;;  %s1985_s9 = scalar_lea.vmem %s2635_s29, 512  ;;  %p2700_p9 = scmp.ne.s32.totalorder %s2693_s7, 0 }
  0x3d   : > { %1694 = vmatprep.subr.bf16.mxu0 %v1693_v9  ;;  %v1701_v32 = vpack.c.bf16 %v567_v31, %v563_v30  ;;  %v562_v35 = vld [vmem:[#allocation2 + $0x120] sm:$0xff]  ;;  %v1669_v37 = vpack.c.bf16 %v443_v34, %v442_v33  ;;  %v566_v38 = vld [vmem:[#allocation2 + $0x168] sm:$0xff]  ;;  %v2238_v41 = vld [vmem:[%s2225_s14 + $0x18] sm:$0xff]  ;;  %812 = vperm.xlu0 %1909, %v2228_v27   ;;  %v2059_v33 = vmov 0.0   ;;  %v2060_v34 = vmov 3   ;;  %p1986_p6 = scmp.ne.s32.totalorder %s2635_s29, %s1985_s9  ;;  %s2074_s25 = smov [#allocation5]  }
  0x3e   : > { %1668 = vmatpush3.bf16.msra.mxu1 %v1665_v25  ;;  %v2234_v39 = vld [vmem:[%s2225_s14 + $0x8] sm:$0xff]  ;;  %v1703_v40 = vpack.c.bf16 %v566_v38, %v562_v35  ;;  %v571_v42 = vld [vmem:[#allocation2 + $0x1b8] sm:$0xff]  ;;  %v575_v43 = vld [vmem:[#allocation2 + $0x200] sm:$0xff]  ;;  %v2061_v35 = vmov 4   ;;  %v2064_v38 = vmov 7   ;;  %s1989_s15 = sshll.u32 %s2074_s25, 4  ;;  %s1990_s15 = int_to_ptr.vmem [resolvable:$false] %s1989_s15 }
  0x3f   : > { %1610 = vmatmul.mubr.msk.f32.vlgmr.msra.gmra.mrb[0].mxu0 %vm309_vm0, %v295_v10  ;;  %1670 = vmatprep.subr.bf16.mxu1 %v1669_v37  ;;  %v1705_v44 = vpack.c.bf16 %v575_v43, %v571_v42  ;;  %v444_v45 = vld [vmem:[#allocation2 + $0x1f0] sm:$0xff]  ;;  %v445_v46 = vld [vmem:[#allocation2 + $0x238] sm:$0xff]  ;;  %v579_v51 = vld [vmem:[#allocation2 + $0x248] sm:$0xff]  ;;  %v2066_v42 = vmov 9   ;;  %v2067_v43 = vmov 10   ;;  %p1987_p10 = pnand %p1986_p6, %p2700_p9  ;;  %s1991_s16 = scalar_lea.vmem %s1990_s15, 1024 }
  0x40   : > { %1612 = vmatprep.mubr.msk.f32.mxu0 %vm309_vm0, %v296_v11  ;;  %1696 = vmatpush1.bf16.msra.mxu0 %v1695_v18  ;;  %v570_v47 = vld [vmem:[#allocation2 + $0x1b0] sm:$0xff]  ;;  %v1673_v48 = vpack.c.bf16 %v445_v46, %v444_v45  ;;  %v574_v49 = vld [vmem:[#allocation2 + $0x1f8] sm:$0xff]  ;;  %v446_v54 = vld [vmem:[#allocation2 + $0x280] sm:$0xff]  ;;  %v2069_v46 = vmov 12   ;;  %p1992_p2 = scmp.lt.s32.totalorder %s2635_s29, %s1990_s15  ;;  %p1993_p3 = scmp.lt.s32.totalorder %s1991_s16, %s1985_s9 }
  0x41   : > { %1698 = vmatprep.subr.bf16.mxu0 %v1697_v21  ;;  %827 = vperm.xlu1 %1910, %v2238_v41   ;;  %v1707_v50 = vpack.c.bf16 %v574_v49, %v570_v47  ;;  %v583_v52 = vld [vmem:[#allocation2 + $0x290] sm:$0xff]  ;;  %v447_v55 = vld [vmem:[#allocation2 + $0x2c8] sm:$0xff]  ;;  %v578_v56 = vld [vmem:[#allocation2 + $0x240] sm:$0xff]  ;;  %p1988_p12 = pneg %p1987_p10 }
  0x42   : > { %1672 = vmatpush3.bf16.msra.mxu1 %v1669_v37  ;;  %817 = vperm.xlu0 %1909, %v2234_v39   ;;  %v1709_v53 = vpack.c.bf16 %v583_v52, %v579_v51  ;;  %v1677_v57 = vpack.c.bf16 %v447_v55, %v446_v54  ;;  %v582_v58 = vld [vmem:[#allocation2 + $0x288] sm:$0xff]  ;;  %v587_v61 = vld [vmem:[#allocation2 + $0x2d8] sm:$0xff]  ;;  %v591_v62 = vld [vmem:[#allocation2 + $0x320] sm:$0xff]  ;;  %v2063_v37 = vmov 6   ;;  %v2070_v52 = vmov 13   ;;  %p1994_p4 = por %p1993_p3, %p1992_p2 }
  0x43   : > { %1613 = vmatmul.mubr.msk.f32.gmra.mrb[2].mxu0 %vm309_vm0, %v297_v12  ;;  %1674 = vmatprep.subr.bf16.mxu1 %v1673_v48  ;;  %v1711_v60 = vpack.c.bf16 %v582_v58, %v578_v56  ;;  %v1713_v63 = vpack.c.bf16 %v591_v62, %v587_v61  ;;  %v448_v0 = vld [vmem:[#allocation2 + $0x310] sm:$0xff]  ;;  %v449_v1 = vld [vmem:[#allocation2 + $0x358] sm:$0xff]  ;;  %v595_v6 = vld [vmem:[#allocation2 + $0x368] sm:$0xff]  ;;  %v435_v61 = vlaneseq }
  0x44   : > { %1700 = vmatpush1.bf16.msra.mxu0 %v1699_v28  ;;  %v586_v2 = vld [vmem:[#allocation2 + $0x2d0] sm:$0xff]  ;;  %v1681_v3 = vpack.c.bf16 %v449_v1, %v448_v0  ;;  %v590_v4 = vld [vmem:[#allocation2 + $0x318] sm:$0xff]  ;;  %v450_v9 = vld [vmem:[#allocation2 + $0x3a0] sm:$0xff]  ;;  %696 = vmatprep.mubr.f32.mxu0 %v2059_v33  ;;  %p1995_p7 = pnand %p1994_p4, %p1988_p12 }
  0x45   : > { %1702 = vmatprep.subr.bf16.mxu0 %v1701_v32  ;;  %1912 = vset.pattern.permute.xlu1 %v2057_v59  ;;  %v1715_v5 = vpack.c.bf16 %v590_v4, %v586_v2  ;;  %v599_v7 = vld [vmem:[#allocation2 + $0x3b0] sm:$0xff]  ;;  %v451_v10 = vld [vmem:[#allocation2 + $0x3e8] sm:$0xff]  ;;  %v594_v11 = vld [vmem:[#allocation2 + $0x360] sm:$0xff]  ;;  %v2308_v0 = vand.u32 127, %v435_v61  ;;  %v2071_v2 = vmov 14  }
  0x46   : > { %1676 = vmatpush3.bf16.msra.mxu1 %v1673_v48  ;;  %835 = vperm.xlu1 %1912, %v2234_v39   ;;  %v1717_v8 = vpack.c.bf16 %v599_v7, %v595_v6  ;;  %v1685_v12 = vpack.c.bf16 %v451_v10, %v450_v9  ;;  %v598_v13 = vld [vmem:[#allocation2 + $0x3a8] sm:$0xff]  ;;  %v603_v16 = vld [vmem:[#allocation2 + $0x3f8] sm:$0xff]  ;;  %v607_v17 = vld [vmem:[#allocation2 + $0x440] sm:$0xff]  ;;  %v2072_v9 = vmov 15  }
  0x47   : > { %1678 = vmatprep.subr.bf16.mxu1 %v1677_v57  ;;  %1911 = vset.pattern.permute.xlu0 %v2057_v59  ;;  %v1719_v14 = vpack.c.bf16 %v598_v13, %v594_v11  ;;  %v1721_v18 = vpack.c.bf16 %v607_v17, %v603_v16  ;;  %v452_v19 = vld [vmem:[#allocation2 + $0x430] sm:$0xff]  ;;  %v453_v20 = vld [vmem:[#allocation2 + $0x478] sm:$0xff]  ;;  %v991_v25 = vld [vmem:[#allocation2 + $0x28] sm:$0xff]  ;;  %vm437_vm1 = vcmp.lt.s32.totalorder %v2308_v0, 64 }
  0x48   : > { %1704 = vmatpush1.bf16.msra.mxu0 %v1703_v40  ;;  %831 = vperm.xlu0 %1911, %v2228_v27   ;;  %v602_v21 = vld [vmem:[#allocation2 + $0x3f0] sm:$0xff]  ;;  %v1689_v22 = vpack.c.bf16 %v453_v20, %v452_v19  ;;  %v606_v23 = vld [vmem:[#allocation2 + $0x438] sm:$0xff]  ;;  %v553_v31 = vld [vmem:[#allocation2 + $0x60] sm:$0xff]  ;;  %v2065_v40 = vmov 8  }
  0x49   : > { %1706 = vmatprep.subr.bf16.mxu0 %v1705_v44  ;;  %v1723_v24 = vpack.c.bf16 %v606_v23, %v602_v21  ;;  %v995_v26 = vld [vmem:[#allocation2 + $0x70] sm:$0xff]  ;;  %v549_v30 = vld [vmem:[#allocation2 + $0x18] sm:$0xff]  ;;  %v2068_v44 = vmov 11   ;;  %v1557_v45 = vld [vmem:[%s2686_s3] ss:$0 sm:$0xff] }
  0x4a   : > { %1680 = vmatpush3.bf16.msra.mxu1 %v1677_v57  ;;  %839 = vperm.xlu1 %1912, %v2231_v29   ;;  %v1757_v28 = vpack.c.bf16 %v995_v26, %v991_v25  ;;  %v1725_v32 = vpack.c.bf16 %v553_v31, %v549_v30  ;;  %v990_v21 = vld [vmem:[#allocation2 + $0x20] sm:$0xff]  ;;  %v548_v23 = vld [vmem:[#allocation2 + $0x10] sm:$0xff]  ;;  %v999_v25 = vld [vmem:[#allocation2 + $0xb8] sm:$0xff] }
  0x4b   : > { %1682 = vmatprep.subr.bf16.mxu1 %v1681_v3  ;;  %v557_v30 = vld [vmem:[#allocation2 + $0xa8] sm:$0xff]  ;;  %v561_v31 = vld [vmem:[#allocation2 + $0xf0] sm:$0xff] }
  0x4c   : > { %1708 = vmatpush1.bf16.msra.mxu0 %v1707_v50  ;;  %843 = vperm.xlu0 %1911, %v2238_v41  }
  0x4d   : > { %1710 = vmatprep.subr.bf16.mxu0 %v1709_v53 }
  0x4e   : > { %1684 = vmatpush3.bf16.msra.mxu1 %v1681_v3  ;;  %1913 = vset.pattern.permute.xlu1 %v2058_v15 }
  0x4f   : > { %1686 = vmatprep.subr.bf16.mxu1 %v1685_v12  ;;  %859 = vperm.xlu1 %1913, %v2228_v27  }
  0x50   : > { %1712 = vmatpush1.bf16.msra.mxu0 %v1711_v60  ;;  %1914 = vset.pattern.permute.xlu0 %v2058_v15 }
  0x51   : > { %1714 = vmatprep.subr.bf16.mxu0 %v1713_v63  ;;  %863 = vperm.xlu0 %1914, %v2234_v39  }
  0x52   : > { %1688 = vmatpush3.bf16.msra.mxu1 %v1685_v12 }
  0x53   : > { %1690 = vmatprep.subr.bf16.mxu1 %v1689_v22  ;;  %867 = vperm.xlu1 %1913, %v2231_v29  }
  0x54   : > { %1716 = vmatpush1.bf16.msra.mxu0 %v1715_v5 }
  0x55   : > { %1718 = vmatprep.subr.bf16.mxu0 %v1717_v8  ;;  %1915 = vset.pattern.permute.xlu0 %v2060_v34 }
  0x56   : > { %1692 = vmatpush3.bf16.msra.mxu1 %v1689_v22  ;;  %875 = vperm.xlu0 %1915, %v2228_v27   ;;  %v994_v22 = vld [vmem:[#allocation2 + $0x68] sm:$0xff] }
  0x57   : > { %1726 = vmatprep.subr.bf16.mxu1 %v1725_v32  ;;  %871 = vperm.xlu1 %1913, %v2238_v41  }
  0x58   : > { %1720 = vmatpush1.bf16.msra.mxu0 %v1719_v14 }
  0x59   : > { %1722 = vmatprep.subr.bf16.mxu0 %v1721_v18 }
  0x5a   : > { %887 = vperm.xlu0 %1915, %v2238_v41  }
  0x5b   : > { %1916 = vset.pattern.permute.xlu1 %v2060_v34  ;;  %v1759_v34 = vpack.c.bf16 %v994_v22, %v990_v21  ;;  %v576_v21 = vld [vmem:[#allocation2 + $0x208] sm:$0xff] }
  0x5c   : > { %1724 = vmatpush1.bf16.msra.mxu0 %v1723_v24  ;;  %879 = vperm.xlu1 %1916, %v2234_v39   ;;  %v552_v24 = vld [vmem:[#allocation2 + $0x58] sm:$0xff]  ;;  %v1023_v22 = vld [vmem:[#allocation2 + $0x268] sm:$0xff] }
  0x5d   : > { %1758 = vmatprep.subr.bf16.mxu0 %v1757_v28  ;;  %v1003_v28 = vld [vmem:[#allocation2 + $0x100] sm:$0xff] }
  0x5e   : > { %1918 = vset.pattern.permute.xlu0 %v2061_v35 }
  0x5f   : > { %907 = vperm.xlu0 %1918, %v2234_v39  }
  0x60   : > { %883 = vperm.xlu1 %1916, %v2231_v29  }
  0x63   : > { %1919 = vset.pattern.permute.xlu0 %v2062_v36 }
  0x64   : > { %1917 = vset.pattern.permute.xlu1 %v2061_v35  ;;  %919 = vperm.xlu0 %1919, %v2228_v27  }
  0x65   : > { %903 = vperm.xlu1 %1917, %v2228_v27  }
  0x68   : > { %931 = vperm.xlu0 %1919, %v2238_v41  }
  0x69   : > { %911 = vperm.xlu1 %1917, %v2231_v29  }
  0x6c   : > { %1922 = vset.pattern.permute.xlu0 %v2063_v37 }
  0x6d   : > { %915 = vperm.xlu1 %1917, %v2238_v41   ;;  %951 = vperm.xlu0 %1922, %v2234_v39  }
  0x71   : > { %1920 = vset.pattern.permute.xlu1 %v2062_v36  ;;  %1923 = vset.pattern.permute.xlu0 %v2064_v38 }
  0x72   : > { %923 = vperm.xlu1 %1920, %v2234_v39   ;;  %963 = vperm.xlu0 %1923, %v2228_v27  }
  0x76   : > { %927 = vperm.xlu1 %1920, %v2231_v29   ;;  %975 = vperm.xlu0 %1923, %v2238_v41  }
  0x7a   : > { %1921 = vset.pattern.permute.xlu1 %v2063_v37  ;;  %1926 = vset.pattern.permute.xlu0 %v2065_v40  ;;  %v1727_v37 = vpack.c.bf16 %v552_v24, %v548_v23  ;;  %v1027_v23 = vld [vmem:[#allocation2 + $0x2b0] sm:$0xff] }
  0x7b   : > { %947 = vperm.xlu1 %1921, %v2228_v27   ;;  %1259 = vperm.xlu0 %1926, %v2234_v39  }
  0x7f   : > { %955 = vperm.xlu1 %1921, %v2231_v29   ;;  %1927 = vset.pattern.permute.xlu0 %v2066_v42 }
  0x80   : > { %1271 = vperm.xlu0 %1927, %v2228_v27  }
  0x83   : > { %959 = vperm.xlu1 %1921, %v2238_v41  }
  0x84   : > { %1283 = vperm.xlu0 %1927, %v2238_v41  }
  0x87   : > { %1924 = vset.pattern.permute.xlu1 %v2064_v38  ;;  %v998_v38 = vld [vmem:[#allocation2 + $0xb0] sm:$0xff] }
  0x88   : > { %967 = vperm.xlu1 %1924, %v2234_v39   ;;  %1930 = vset.pattern.permute.xlu0 %v2067_v43 }
  0x89   : > { %1303 = vperm.xlu0 %1930, %v2234_v39  }
  0x8c   : > { %971 = vperm.xlu1 %1924, %v2231_v29  }
  0x8d   : > { %1931 = vset.pattern.permute.xlu0 %v2068_v44 }
  0x8e   : > { %1315 = vperm.xlu0 %1931, %v2228_v27  }
  0x90   : > { %1925 = vset.pattern.permute.xlu1 %v2065_v40  ;;  %v1002_v40 = vld [vmem:[#allocation2 + $0xf8] sm:$0xff] }
  0x91   : > { %1255 = vperm.xlu1 %1925, %v2228_v27  }
  0x92   : > { %1327 = vperm.xlu0 %1931, %v2238_v41  }
  0x95   : > { %1263 = vperm.xlu1 %1925, %v2231_v29  }
  0x96   : > { %1934 = vset.pattern.permute.xlu0 %v2069_v46 }
  0x97   : > { %1347 = vperm.xlu0 %1934, %v2234_v39  }
  0x99   : > { %1267 = vperm.xlu1 %1925, %v2238_v41  }
  0x9b   : > { %1935 = vset.pattern.permute.xlu0 %v2070_v52 }
  0x9c   : > { %1359 = vperm.xlu0 %1935, %v2228_v27  }
  0x9d   : > { %1928 = vset.pattern.permute.xlu1 %v2066_v42 }
  0x9e   : > { %1275 = vperm.xlu1 %1928, %v2234_v39  }
  0xa0   : > { %1371 = vperm.xlu0 %1935, %v2238_v41  }
  0xa2   : > { %1279 = vperm.xlu1 %1928, %v2231_v29  }
  0xa4   : > { %1938 = vset.pattern.permute.xlu0 %v2071_v2 }
  0xa5   : > { %1391 = vperm.xlu0 %1938, %v2234_v39  }
  0xa6   : > { %1929 = vset.pattern.permute.xlu1 %v2067_v43  ;;  %v1761_v43 = vpack.c.bf16 %v1003_v28, %v999_v25  ;;  %v581_v25 = vld [vmem:[#allocation2 + $0x258] sm:$0xff] }
  0xa7   : > { %1299 = vperm.xlu1 %1929, %v2228_v27  }
  0xa9   : > { %1939 = vset.pattern.permute.xlu0 %v2072_v9 }
  0xaa   : > { %1403 = vperm.xlu0 %1939, %v2228_v27  }
  0xab   : > { %1307 = vperm.xlu1 %1929, %v2231_v29  }
  0xae   : > { %1415 = vperm.xlu0 %1939, %v2238_v41  }
  0xaf   : > { %1311 = vperm.xlu1 %1929, %v2238_v41  }
  0xb3   : > { %1932 = vset.pattern.permute.xlu1 %v2068_v44  ;;  %v1729_v44 = vpack.c.bf16 %v561_v31, %v557_v30  ;;  %v1773_v31 = vpack.c.bf16 %v1027_v23, %v1023_v22 }
  0xb4   : > { %1319 = vperm.xlu1 %1932, %v2234_v39  }
  0xb8   : > { %1323 = vperm.xlu1 %1932, %v2231_v29  }
  0xbb   : > { %v823_v58 = vpop.permute.xlu1 %822 }
  0xbc   : > { %1933 = vset.pattern.permute.xlu1 %v2069_v46  ;;  %v813_v60 = vpop.permute.xlu0 %812  ;;  %v560_v46 = vld [vmem:[#allocation2 + $0xe8] sm:$0xff] }
  0xbd   : > { %1343 = vperm.xlu1 %1933, %v2228_v27  }
  0xc0   : > { %v828_v63 = vpop.permute.xlu1 %827 }
  0xc1   : > { %1351 = vperm.xlu1 %1933, %v2231_v29   ;;  %v818_v1 = vpop.permute.xlu0 %817 }
  0xc5   : > { %v836_v4 = vpop.permute.xlu1 %835  ;;  %1355 = vperm.xlu1 %1933, %v2238_v41  }
  0xc6   : > { %v2316_v7 = vsel %vm437_vm1, %v818_v1, %v836_v4  ;;  %v1015_v4 = vld [vmem:[#allocation2 + $0x1d8] sm:$0xff] }
  0xc7   : > { %v832_v10 = vpop.permute.xlu0 %831 }
  0xc8   : > { %v2322_v12 = vsel %vm437_vm1, %v813_v60, %v832_v10  ;;  %v1010_v60 = vld [vmem:[#allocation2 + $0x188] sm:$0xff] }
  0xc9   : > { %v840_v13 = vpop.permute.xlu1 %839  ;;  %1936 = vset.pattern.permute.xlu1 %v2070_v52  ;;  %v569_v52 = vld [vmem:[#allocation2 + $0x180] sm:$0xff] }
  0xca   : > { %v2326_v16 = vsel %vm437_vm1, %v823_v58, %v840_v13  ;;  %1363 = vperm.xlu1 %1936, %v2234_v39   ;;  %v1018_v13 = vld [vmem:[#allocation2 + $0x218] sm:$0xff] }
  0xcb   : > { %v844_v18 = vpop.permute.xlu0 %843 }
  0xcc   : > { %v2332_v19 = vsel %vm437_vm1, %v828_v63, %v844_v18 }
  0xce   : > { %1367 = vperm.xlu1 %1936, %v2231_v29   ;;  %v2335_v20 = vpop.permute.xlu1 %859 }
  0xd2   : > { %1937 = vset.pattern.permute.xlu1 %v2071_v2  ;;  %v2337_v35 = vpop.permute.xlu1 %867 }
  0xd3   : > { %1387 = vperm.xlu1 %1937, %v2228_v27   ;;  %v1763_v27 = vpack.c.bf16 %v1002_v40, %v998_v38 }
  0xd7   : > { %1395 = vperm.xlu1 %1937, %v2231_v29  }
  0xdb   : > { %1399 = vperm.xlu1 %1937, %v2238_v41  }
  0xdf   : > { %1940 = vset.pattern.permute.xlu1 %v2072_v9 }
  0xe0   : > { %1407 = vperm.xlu1 %1940, %v2234_v39  }
  0xe4   : > { %1411 = vperm.xlu1 %1940, %v2231_v29  }
 0x112   : > { %v1611_v47 = vpop.f32.mrb[0].mxu0 }
 0x113   : > { %v2291_v48 = vadd.f32 %v1611_v47, %v1557_v45  ;;  %v388_v49 = vpop.f32.mrb[1].mxu0  ;;  %v1007_v47 = vld [vmem:[#allocation2 + $0x148] sm:$0xff] }
 0x114   : > { %v2293_v50 = vadd.f32 %v1557_v45, %v388_v49 }
 0x115   : > { %v1563_v51 = vmul.f32 -1.442695, %v2291_v48 }
 0x116   : > { %v1562_v53 = vmul.f32 -1.442695, %v2293_v50  ;;  %v1614_v54 = vpop.f32.mrb[2].mxu0 }
 0x117   : > { %1941 = vpow2.f32 %v1563_v51  ;;  %v2299_v55 = vadd.f32 %v1614_v54, %v1557_v45  ;;  %v398_v56 = vpop.f32.mrb[3].mxu0  ;;  %v565_v51 = vld [vmem:[#allocation2 + $0x138] sm:$0xff] }
 0x118   : > { %1943 = vpow2.f32 %v1562_v53  ;;  %v2301_v57 = vadd.f32 %v1557_v45, %v398_v56  ;;  %v556_v45 = vld [vmem:[#allocation2 + $0xa0] sm:$0xff]  ;;  %v864_v53 = vpop.permute.xlu0 %863  ;;  %v1733_v2 = vpack.c.bf16 %v569_v52, %v565_v51  ;;  %v593_v51 = vld [vmem:[#allocation2 + $0x330] sm:$0xff] }
 0x119   : > { %v1565_v59 = vmul.f32 -1.442695, %v2299_v55  ;;  %v1731_v58 = vpack.c.bf16 %v560_v46, %v556_v45  ;;  %v1031_v45 = vld [vmem:[#allocation2 + $0x2f8] sm:$0xff]  ;;  %v1035_v46 = vld [vmem:[#allocation2 + $0x340] sm:$0xff] }
 0x11a   : > { %v1564_v62 = vmul.f32 -1.442695, %v2301_v57 }
 0x11b   : > { %1945 = vpow2.f32 %v1565_v59  ;;  %v1006_v59 = vld [vmem:[#allocation2 + $0x140] sm:$0xff] }
 0x11c   : > { %1947 = vpow2.f32 %v1564_v62  ;;  %v564_v62 = vld [vmem:[#allocation2 + $0x130] sm:$0xff] }
 0x121   : > { %v1942_v3 = vpop.eup %1941 }
 0x122   : > { %v1944_v5 = vpop.eup %1943  ;;  %v420_v6 = vadd.f32 1.0, %v1942_v3  ;;  %v568_v3 = vld [vmem:[#allocation2 + $0x178] sm:$0xff] }
 0x123   : > { %v419_v8 = vadd.f32 1.0, %v1944_v5  ;;  %v1019_v5 = vld [vmem:[#allocation2 + $0x220] sm:$0xff] }
 0x124   : > { %1949 = vrcp.f32 %v420_v6  ;;  %v577_v6 = vld [vmem:[#allocation2 + $0x210] sm:$0xff]  ;;  %v1769_v10 = vpack.c.bf16 %v1019_v5, %v1015_v4 }
 0x125   : > { %v1946_v11 = vpop.eup %1945  ;;  %1951 = vrcp.f32 %v419_v8  ;;  %v1767_v8 = vpack.c.bf16 %v1010_v60, %v1006_v59  ;;  %v592_v60 = vld [vmem:[#allocation2 + $0x328] sm:$0xff] }
 0x126   : > { %v1948_v14 = vpop.eup %1947  ;;  %v422_v15 = vadd.f32 1.0, %v1946_v11  ;;  %v1014_v11 = vld [vmem:[#allocation2 + $0x1d0] sm:$0xff] }
 0x127   : > { %v421_v17 = vadd.f32 1.0, %v1948_v14  ;;  %v572_v14 = vld [vmem:[#allocation2 + $0x1c0] sm:$0xff]  ;;  %v1771_v28 = vpack.c.bf16 %v1018_v13, %v1014_v11  ;;  %v600_v11 = vld [vmem:[#allocation2 + $0x3b8] sm:$0xff] }
 0x128   : > { %1953 = vrcp.f32 %v422_v15  ;;  %v1739_v30 = vpack.c.bf16 %v576_v21, %v572_v14  ;;  %v1047_v13 = vld [vmem:[#allocation2 + $0x418] sm:$0xff]  ;;  %v1051_v14 = vld [vmem:[#allocation2 + $0x460] sm:$0xff] }
 0x129   : > { %1955 = vrcp.f32 %v421_v17  ;;  %v2362_v17 = vpop.permute.xlu0 %875  ;;  %v1785_v23 = vpack.c.bf16 %v1051_v14, %v1047_v13  ;;  %v1024_v14 = vld [vmem:[#allocation2 + $0x270] sm:$0xff] }
 0x12d   : > { %v888_v40 = vpop.permute.xlu0 %887 }
 0x12e   : > { %v1950_v26 = vpop.eup %1949 }
 0x12f   : > { %v1952_v32 = vpop.eup %1951  ;;  %v2344_v42 = vmul.f32 %v1950_v26, %v2291_v48  ;;  %v2349_v48 = vpop.permute.xlu1 %871  ;;  %v585_v26 = vld [vmem:[#allocation2 + $0x2a0] sm:$0xff] }
 0x130   : > { %v2340_v36 = vmul.f32 %v1952_v32, %v2293_v50  ;;  %v1011_v50 = vld [vmem:[#allocation2 + $0x190] sm:$0xff]  ;;  %v1022_v32 = vld [vmem:[#allocation2 + $0x260] sm:$0xff] }
 0x131   : > { %v1765_v1 = vpack.c.bf16 %v1011_v50, %v1007_v47  ;;  %v589_v50 = vld [vmem:[#allocation2 + $0x2e8] sm:$0xff] }
 0x132   : > { %v1954_v49 = vpop.eup %1953  ;;  %1647 = vmatprep.mubr.f32.mxu1 %v2340_v36  ;;  %697 = vmatmul.mubr.f32.vlgmr.msra.gmra.mrb[4].mxu0 %v2340_v36  ;;  %v1745_v59 = vpack.c.bf16 %v593_v51, %v589_v50  ;;  %v1000_v51 = vld [vmem:[#allocation2 + $0xc0] sm:$0xff] }
 0x133   : > { %v1956_v54 = vpop.eup %1955  ;;  %1760 = vmatpush1.bf16.msra.mxu0 %v1759_v34  ;;  %1648 = vmatmul.mubr.f32.vlgmr.msra.gmra.mrb[0].mxu1 %v2344_v42  ;;  %v2356_v63 = vmul.f32 %v1954_v49, %v2299_v55  ;;  %v1735_v55 = vpack.c.bf16 %v568_v3, %v564_v62  ;;  %v880_v15 = vpop.permute.xlu1 %879  ;;  %v1026_v34 = vld [vmem:[#allocation2 + $0x2a8] sm:$0xff]  ;;  %v2380_v49 = vsel %vm437_vm1, %v2349_v48, %v888_v40  ;;  %v1043_v62 = vld [vmem:[#allocation2 + $0x3d0] sm:$0xff]  ;;  %v601_v3 = vld [vmem:[#allocation2 + $0x3c0] sm:$0xff] }
 0x134   : > { %v2352_v56 = vmul.f32 %v1956_v54, %v2301_v57  ;;  %1728 = vmatpush1.bf16.msra.mxu1 %v1727_v37  ;;  %702 = vmatprep.mubr.f32.mxu0 %v2059_v33  ;;  %v573_v57 = vld [vmem:[#allocation2 + $0x1c8] sm:$0xff]  ;;  %v2366_v24 = vsel %vm437_vm1, %v864_v53, %v880_v15  ;;  %v580_v37 = vld [vmem:[#allocation2 + $0x250] sm:$0xff]  ;;  %v1775_v52 = vpack.c.bf16 %v1026_v34, %v1022_v32  ;;  %v993_v32 = vld [vmem:[#allocation2 + $0x38] sm:$0xff] }
 0x135   : > { %1762 = vmatprep.subr.bf16.mxu0 %v1761_v43  ;;  %1730 = vmatprep.subr.bf16.mxu1 %v1729_v44  ;;  %v1737_v18 = vpack.c.bf16 %v577_v6, %v573_v57  ;;  %v1741_v43 = vpack.c.bf16 %v585_v26, %v581_v25  ;;  %v584_v44 = vld [vmem:[#allocation2 + $0x298] sm:$0xff]  ;;  %v1777_v54 = vpack.c.bf16 %v1035_v46, %v1031_v45  ;;  %v1039_v48 = vld [vmem:[#allocation2 + $0x388] sm:$0xff]  ;;  %v1038_v6 = vld [vmem:[#allocation2 + $0x380] sm:$0xff] }
 0x136   : > { %1650 = vmatprep.mubr.f32.mxu1 %v2352_v56  ;;  %703 = vmatmul.mubr.f32.gmra.mrb[6].mxu0 %v2344_v42  ;;  %v1743_v53 = vpack.c.bf16 %v584_v44, %v580_v37  ;;  %v1781_v57 = vpack.c.bf16 %v1043_v62, %v1039_v48  ;;  %v605_v15 = vld [vmem:[#allocation2 + $0x408] sm:$0xff]  ;;  %v1046_v25 = vld [vmem:[#allocation2 + $0x410] sm:$0xff]  ;;  %v1050_v26 = vld [vmem:[#allocation2 + $0x458] sm:$0xff] }
 0x137   : > { %1764 = vmatpush1.bf16.msra.mxu0 %v1763_v27  ;;  %1651 = vmatmul.mubr.f32.gmra.mrb[2].mxu1 %v2356_v63  ;;  %v884_v38 = vpop.permute.xlu1 %883  ;;  %v1030_v27 = vld [vmem:[#allocation2 + $0x2f0] sm:$0xff]  ;;  %v997_v34 = vld [vmem:[#allocation2 + $0x80] sm:$0xff]  ;;  %v1787_v39 = vpack.c.bf16 %v1050_v26, %v1046_v25  ;;  %v1001_v44 = vld [vmem:[#allocation2 + $0xc8] sm:$0xff] }
 0x138   : > { %1732 = vmatpush1.bf16.msra.mxu1 %v1731_v58  ;;  %708 = vmatprep.mubr.f32.mxu0 %v2059_v33  ;;  %v2375_v47 = vsel %vm437_vm1, %v2337_v35, %v884_v38  ;;  %v1034_v35 = vld [vmem:[#allocation2 + $0x338] sm:$0xff]  ;;  %v588_v58 = vld [vmem:[#allocation2 + $0x2e0] sm:$0xff]  ;;  %v1789_v38 = vpack.c.bf16 %v997_v34, %v993_v32  ;;  %v992_v40 = vld [vmem:[#allocation2 + $0x30] sm:$0xff] }
 0x139   : > { %1766 = vmatprep.subr.bf16.mxu0 %v1765_v1  ;;  %1734 = vmatprep.subr.bf16.mxu1 %v1733_v2  ;;  %v597_v2 = vld [vmem:[#allocation2 + $0x378] sm:$0xff]  ;;  %v1779_v4 = vpack.c.bf16 %v1034_v35, %v1030_v27  ;;  %v1747_v5 = vpack.c.bf16 %v592_v60, %v588_v58  ;;  %v1005_v45 = vld [vmem:[#allocation2 + $0x110] sm:$0xff]  ;;  %v1017_v62 = vld [vmem:[#allocation2 + $0x1e8] sm:$0xff] }
 0x13a   : > { %709 = vmatmul.mubr.f32.gmra.mrb[8].mxu0 %v2352_v56  ;;  %785 = vmatprep.mubr.f32.mxu1 %v2059_v33  ;;  %v1793_v29 = vpack.c.bf16 %v1005_v45, %v1001_v44  ;;  %v1012_v60 = vld [vmem:[#allocation2 + $0x198] sm:$0xff]  ;;  %v1032_v25 = vld [vmem:[#allocation2 + $0x300] sm:$0xff]  ;;  %v1036_v26 = vld [vmem:[#allocation2 + $0x348] sm:$0xff] }
 0x13b   : > { %1768 = vmatpush1.bf16.msra.mxu0 %v1767_v8  ;;  %714 = vmatprep.mubr.f32.mxu0 %v2059_v33  ;;  %v2385_v1 = vpop.permute.xlu1 %903  ;;  %v1042_v8 = vld [vmem:[#allocation2 + $0x3c8] sm:$0xff]  ;;  %v1040_v34 = vld [vmem:[#allocation2 + $0x390] sm:$0xff]  ;;  %v1048_v45 = vld [vmem:[#allocation2 + $0x420] sm:$0xff] }
 0x13c   : > { %1736 = vmatpush1.bf16.msra.mxu1 %v1735_v55  ;;  %1770 = vmatprep.subr.bf16.mxu0 %v1769_v10  ;;  %v596_v55 = vld [vmem:[#allocation2 + $0x370] sm:$0xff]  ;;  %v1749_v10 = vpack.c.bf16 %v601_v3, %v597_v2  ;;  %v1783_v21 = vpack.c.bf16 %v1042_v8, %v1038_v6  ;;  %v1025_v8 = vld [vmem:[#allocation2 + $0x278] sm:$0xff] }
 0x13d   : > { %1738 = vmatprep.subr.bf16.mxu1 %v1737_v18  ;;  %v609_v18 = vld [vmem:[#allocation2 + $0x450] sm:$0xff]  ;;  %v1751_v22 = vpack.c.bf16 %v600_v11, %v596_v55  ;;  %v1029_v55 = vld [vmem:[#allocation2 + $0x2c0] sm:$0xff] }
 0x13e   : > { %715 = vmatmul.mubr.f32.gmra.mrb[10].mxu0 %v2356_v63  ;;  %v1021_v2 = vld [vmem:[#allocation2 + $0x230] sm:$0xff]  ;;  %v1805_v13 = vpack.c.bf16 %v1029_v55, %v1025_v8  ;;  %v1566_v8 = vld [vmem:[%s2688_s5 + $0x8] ss:$0 sm:$0xff] }
 0x13f   : > { %1772 = vmatpush1.bf16.msra.mxu0 %v1771_v28  ;;  %1140 = vmatprep.mubr.f32.mxu0 %v2059_v33  ;;  %v912_v41 = vpop.permute.xlu1 %911  ;;  %v604_v28 = vld [vmem:[#allocation2 + $0x400] sm:$0xff]  ;;  %v1801_v6 = vpack.c.bf16 %v1021_v2, %v1017_v62 }
 0x140   : > { %1740 = vmatpush1.bf16.msra.mxu1 %v1739_v30  ;;  %1774 = vmatprep.subr.bf16.mxu0 %v1773_v31  ;;  %v1753_v30 = vpack.c.bf16 %v609_v18, %v605_v15  ;;  %v608_v31 = vld [vmem:[#allocation2 + $0x448] sm:$0xff]  ;;  %v1037_v18 = vld [vmem:[#allocation2 + $0x350] sm:$0xff]  ;;  %v2457_v62 = vld [vmem:[%s2688_s5] sm:$0xf] }
 0x141   : > { %1742 = vmatprep.subr.bf16.mxu1 %v1741_v43  ;;  %v1755_v37 = vpack.c.bf16 %v608_v31, %v604_v28  ;;  %v996_v43 = vld [vmem:[#allocation2 + $0x78] sm:$0xff]  ;;  %v1033_v15 = vld [vmem:[#allocation2 + $0x308] sm:$0xff]  ;;  %v1811_v31 = vpack.c.bf16 %v1036_v26, %v1032_v25 }
 0x142   : > { %v1791_v50 = vpack.c.bf16 %v996_v43, %v992_v40  ;;  %v1041_v28 = vld [vmem:[#allocation2 + $0x398] sm:$0xff]  ;;  %v1053_v40 = vld [vmem:[#allocation2 + $0x470] sm:$0xff] }
 0x143   : > { %1776 = vmatpush1.bf16.msra.mxu0 %v1775_v52  ;;  %v2389_v9 = vpop.permute.xlu1 %915  ;;  %v1004_v52 = vld [vmem:[#allocation2 + $0x108] sm:$0xff] }
 0x144   : > { %1744 = vmatpush1.bf16.msra.mxu1 %v1743_v53  ;;  %1778 = vmatprep.subr.bf16.mxu0 %v1777_v54  ;;  %v1009_v53 = vld [vmem:[#allocation2 + $0x158] sm:$0xff]  ;;  %v1013_v54 = vld [vmem:[#allocation2 + $0x1a0] sm:$0xff]  ;;  %v1795_v35 = vpack.c.bf16 %v1004_v52, %v1000_v51 }
 0x145   : > { %1746 = vmatprep.subr.bf16.mxu1 %v1745_v59  ;;  %v1008_v59 = vld [vmem:[#allocation2 + $0x150] sm:$0xff]  ;;  %v1797_v48 = vpack.c.bf16 %v1013_v54, %v1009_v53 }
 0x146   : > { %v1799_v3 = vpack.c.bf16 %v1012_v60, %v1008_v59 }
 0x147   : > { %1780 = vmatpush1.bf16.msra.mxu0 %v1779_v4  ;;  %v2392_v46 = vpop.permute.xlu1 %923 }
 0x148   : > { %1748 = vmatpush1.bf16.msra.mxu1 %v1747_v5  ;;  %1782 = vmatprep.subr.bf16.mxu0 %v1781_v57  ;;  %v1016_v5 = vld [vmem:[#allocation2 + $0x1e0] sm:$0xff]  ;;  %v1020_v57 = vld [vmem:[#allocation2 + $0x228] sm:$0xff] }
 0x149   : > { %1750 = vmatprep.subr.bf16.mxu1 %v1749_v10  ;;  %v1803_v10 = vpack.c.bf16 %v1020_v57, %v1016_v5 }
 0x14b   : > { %1784 = vmatpush1.bf16.msra.mxu0 %v1783_v21  ;;  %v928_v27 = vpop.permute.xlu1 %927 }
 0x14c   : > { %1752 = vmatpush1.bf16.msra.mxu1 %v1751_v22  ;;  %1786 = vmatprep.subr.bf16.mxu0 %v1785_v23  ;;  %v2398_v58 = vsel %vm437_vm1, %v912_v41, %v928_v27  ;;  %v1028_v41 = vld [vmem:[#allocation2 + $0x2b8] sm:$0xff]  ;;  %v1809_v23 = vpack.c.bf16 %v1037_v18, %v1033_v15  ;;  %v890_v15 = vsel %vm437_vm1, %v2335_v20, %v2362_v17 }
 0x14d   : > { %1754 = vmatprep.subr.bf16.mxu1 %v1753_v30  ;;  %v1807_v21 = vpack.c.bf16 %v1028_v41, %v1024_v14  ;;  %v1045_v30 = vld [vmem:[#allocation2 + $0x3e0] sm:$0xff] }
 0x14e   : > { %v1813_v32 = vpack.c.bf16 %v1045_v30, %v1041_v28 }
 0x14f   : > { %1788 = vmatpush1.bf16.msra.mxu0 %v1787_v39  ;;  %v2404_v4 = vpop.permute.xlu1 %947  ;;  %v1044_v39 = vld [vmem:[#allocation2 + $0x3d8] sm:$0xff] }
 0x150   : > { %1756 = vmatpush1.bf16.msra.mxu1 %v1755_v37  ;;  %1790 = vmatprep.subr.bf16.mxu0 %v1789_v38  ;;  %v1815_v43 = vpack.c.bf16 %v1044_v39, %v1040_v34 }
 0x151   : > { %1821 = vmatprep.subr.bf16.mxu1 %v1789_v38  ;;  %v1049_v38 = vld [vmem:[#allocation2 + $0x428] sm:$0xff] }
 0x152   : > { %1141 = vmatmul.mubr.f32.vlgmr.msra.gmra.mrb[12].mxu0 %v2340_v36  ;;  %v1817_v44 = vpack.c.bf16 %v1053_v40, %v1049_v38 }
 0x153   : > { %786 = vmatmul.mubr.f32.vlgmr.msra.gmra.mrb[4].mxu1 %v2340_v36  ;;  %1792 = vmatpush1.bf16.msra.mxu0 %v1791_v50  ;;  %v956_v11 = vpop.permute.xlu1 %955 }
 0x154   : > { %1829 = vmatpush1.bf16.msra.mxu1 %v1791_v50  ;;  %1146 = vmatprep.mubr.f32.mxu0 %v2059_v33  ;;  %v1052_v50 = vld [vmem:[#allocation2 + $0x468] sm:$0xff] }
 0x155   : > { %791 = vmatprep.mubr.f32.mxu1 %v2059_v33  ;;  %1794 = vmatprep.subr.bf16.mxu0 %v1793_v29 }
 0x156   : > { %1147 = vmatmul.mubr.f32.gmra.mrb[14].mxu0 %v2344_v42  ;;  %1822 = vmatprep.subr.bf16.mxu1 %v1793_v29  ;;  %v1819_v29 = vpack.c.bf16 %v1052_v50, %v1048_v45 }
 0x157   : > { %792 = vmatmul.mubr.f32.gmra.mrb[6].mxu1 %v2344_v42  ;;  %1796 = vmatpush1.bf16.msra.mxu0 %v1795_v35  ;;  %v2414_v22 = vpop.permute.xlu1 %959 }
 0x158   : > { %1830 = vmatpush1.bf16.msra.mxu1 %v1795_v35  ;;  %1152 = vmatprep.mubr.f32.mxu0 %v2059_v33  ;;  %v2436_v35 = vpop.permute.xlu0 %907 }
 0x159   : > { %797 = vmatprep.mubr.f32.mxu1 %v2059_v33  ;;  %1798 = vmatprep.subr.bf16.mxu0 %v1797_v48 }
 0x15a   : > { %1153 = vmatmul.mubr.f32.gmra.mrb[16].mxu0 %v2352_v56  ;;  %1823 = vmatprep.subr.bf16.mxu1 %v1797_v48 }
 0x15b   : > { %798 = vmatmul.mubr.f32.gmra.mrb[8].mxu1 %v2352_v56  ;;  %1800 = vmatpush1.bf16.msra.mxu0 %v1799_v3  ;;  %v2418_v37 = vpop.permute.xlu1 %967 }
 0x15c   : > { %1831 = vmatpush1.bf16.msra.mxu1 %v1799_v3  ;;  %1158 = vmatprep.mubr.f32.mxu0 %v2059_v33 }
 0x15d   : > { %803 = vmatprep.mubr.f32.mxu1 %v2059_v33  ;;  %1802 = vmatprep.subr.bf16.mxu0 %v1801_v6 }
 0x15e   : > { %1159 = vmatmul.mubr.f32.gmra.mrb[18].mxu0 %v2356_v63  ;;  %1824 = vmatprep.subr.bf16.mxu1 %v1801_v6 }
 0x15f   : > { %804 = vmatmul.mubr.f32.gmra.mrb[10].mxu1 %v2356_v63  ;;  %1804 = vmatpush1.bf16.msra.mxu0 %v1803_v10  ;;  %v972_v51 = vpop.permute.xlu1 %971 }
 0x160   : > { %1832 = vmatpush1.bf16.msra.mxu1 %v1803_v10  ;;  %1806 = vmatprep.subr.bf16.mxu0 %v1805_v13  ;;  %v2422_v52 = vsel %vm437_vm1, %v956_v11, %v972_v51 }
 0x161   : > { %1825 = vmatprep.subr.bf16.mxu1 %v1805_v13  ;;  %1229 = vmatprep.mubr.f32.mxu0 %v2059_v33 }
 0x162   : > { %1235 = vmatprep.mubr.f32.mxu1 %v2059_v33 }
 0x163   : > { %1808 = vmatpush1.bf16.msra.mxu0 %v1807_v21  ;;  %v2430_v53 = vpop.permute.xlu1 %1255 }
 0x164   : > { %1833 = vmatpush1.bf16.msra.mxu1 %v1807_v21  ;;  %1810 = vmatprep.subr.bf16.mxu0 %v1809_v23 }
 0x165   : > { %1826 = vmatprep.subr.bf16.mxu1 %v1809_v23 }
 0x167   : > { %1812 = vmatpush1.bf16.msra.mxu0 %v1811_v31  ;;  %v2432_v54 = vpop.permute.xlu1 %1263 }
 0x168   : > { %1834 = vmatpush1.bf16.msra.mxu1 %v1811_v31  ;;  %1814 = vmatprep.subr.bf16.mxu0 %v1813_v32 }
 0x169   : > { %1827 = vmatprep.subr.bf16.mxu1 %v1813_v32 }
 0x16b   : > { %1816 = vmatpush1.bf16.msra.mxu0 %v1815_v43  ;;  %v2434_v27 = vpop.permute.xlu1 %1267 }
 0x16c   : > { %1835 = vmatpush1.bf16.msra.mxu1 %v1815_v43  ;;  %1818 = vmatprep.subr.bf16.mxu0 %v1817_v44 }
 0x16d   : > { %1828 = vmatprep.subr.bf16.mxu1 %v1817_v44 }
 0x16f   : > { %1820 = vmatpush1.bf16.msra.mxu0 %v1819_v29  ;;  %v2438_v59 = vpop.permute.xlu1 %1275 }
 0x170   : > { %1836 = vmatpush1.bf16.msra.mxu1 %v1819_v29 }
 0x172   : > { %1230 = vmatmul.mubr.f32.vlgmr.msra.gmra.mrb[20].mxu0 %v2340_v36  ;;  %v2440_v36 = vpop.permute.xlu0 %919 }
 0x173   : > { %1236 = vmatmul.mubr.f32.vlgmr.msra.gmra.mrb[12].mxu1 %v2344_v42  ;;  %v2442_v42 = vpop.permute.xlu1 %1279 }
 0x174   : > { %1241 = vmatprep.mubr.f32.mxu1 %v2059_v33 }
 0x176   : > { %v2444_v60 = vpop.permute.xlu0 %931 }
 0x177   : > { %1242 = vmatmul.mubr.f32.gmra.mrb[14].mxu1 %v2352_v56  ;;  %v2446_v56 = vpop.permute.xlu1 %1299 }
 0x178   : > { %1247 = vmatprep.mubr.f32.mxu1 %v2059_v33  ;;  %v2449_v33 = vshrl.u32 %v435_v61, 7 }
 0x17a   : > { %v614_v48 = vsub.s32 0, %v2449_v33  ;;  %v618_v2 = vsub.s32 1, %v2449_v33 }
 0x17b   : > { %1248 = vmatmul.mubr.f32.gmra.mrb[16].mxu1 %v2356_v63  ;;  %v2451_v63 = vpop.permute.xlu0 %951  ;;  %v2460_v3 = vpop.permute.xlu1 %1307 }
 0x17c   : > { %v615_v5 = vrot.slane %v2457_v62, %v614_v48  ;;  %v619_v61 = vrot.slane %v2457_v62, %v618_v2 }
 0x17f   : > { %v2465_v57 = vpop.permute.xlu0 %963  ;;  %v2473_v55 = vpop.permute.xlu1 %1311 }
 0x183   : > { %v2480_v23 = vpop.permute.xlu0 %975  ;;  %v2482_v38 = vpop.permute.xlu1 %1319 }
 0x187   : > { %v2486_v51 = vpop.permute.xlu0 %1259 }
 0x205   : > { %v698_v6 = vpop.f32.mrb[4].mxu0 }
 0x206   : > { %v699_v10 = vadd.f32 %v698_v6, %v615_v5  ;;  %v1649_v11 = vpop.f32.mrb[0].mxu1  ;;  %v700_v13 = vpop.f32.mrb[5].mxu0 }
 0x207   : > { %v701_v14 = vadd.f32 %v700_v13, %v619_v61  ;;  %v527_v41 = vpop.f32.mrb[1].mxu1  ;;  %v533_v40 = vadd.f32 %v1649_v11, %v1566_v8 }
 0x208   : > { %v850_v18 = vmul.f32 %v2322_v12, %v699_v10  ;;  %v528_v21 = vadd.f32 %v1566_v8, %v527_v41  ;;  %v2492_v41 = vpop.permute.xlu1 %1323 }
 0x209   : > { %v894_v25 = vmul.f32 %v890_v15, %v701_v14  ;;  %v704_v26 = vpop.f32.mrb[6].mxu0 }
 0x20a   : > { %v854_v28 = vadd.f32 %v850_v18, %v528_v21  ;;  %v705_v30 = vadd.f32 %v704_v26, %v615_v5  ;;  %v1652_v31 = vpop.f32.mrb[2].mxu1  ;;  %v706_v32 = vpop.f32.mrb[7].mxu0 }
 0x20b   : > { %v707_v34 = vadd.f32 %v706_v32, %v619_v61  ;;  %v537_v39 = vpop.f32.mrb[3].mxu1  ;;  %v543_v21 = vadd.f32 %v1652_v31, %v1566_v8 }
 0x20c   : > { %v898_v43 = vadd.f32 %v894_v25, %v854_v28  ;;  %v851_v44 = vmul.f32 %v2316_v7, %v705_v30  ;;  %v538_v10 = vadd.f32 %v1566_v8, %v537_v39  ;;  %v1272_v28 = vpop.permute.xlu0 %1271  ;;  %v2498_v32 = vpop.permute.xlu1 %1343  ;;  %v626_v8 = vsub.s32 3, %v2449_v33 }
 0x20d   : > { %v895_v20 = vmul.f32 %v2366_v24, %v707_v34  ;;  %v710_v12 = vpop.f32.mrb[8].mxu0 }
 0x20e   : > { %v855_v17 = vadd.f32 %v851_v44, %v533_v40  ;;  %v711_v45 = vadd.f32 %v710_v12, %v615_v5  ;;  %v712_v50 = vpop.f32.mrb[9].mxu0  ;;  %v2526_v44 = vrot.slane %v2457_v62, %v626_v8 }
 0x20f   : > { %v713_v29 = vadd.f32 %v712_v50, %v619_v61 }
 0x210   : > { %v2488_v6 = vadd.f32 %v895_v20, %v855_v17  ;;  %v852_v13 = vmul.f32 %v2326_v16, %v711_v45  ;;  %v2504_v39 = vpop.permute.xlu1 %1351 }
 0x211   : > { %v896_v14 = vmul.f32 %v2375_v47, %v713_v29  ;;  %v716_v11 = vpop.f32.mrb[10].mxu0  ;;  %v2502_v47 = vpop.permute.xlu0 %1283  ;;  %v1286_v29 = vsel %vm437_vm1, %v2430_v53, %v1272_v28  ;;  %v978_v53 = vsel %vm437_vm1, %v2404_v4, %v2465_v57  ;;  %v979_v4 = vsel %vm437_vm1, %v2451_v63, %v2418_v37 }
 0x212   : > { %v856_v7 = vadd.f32 %v852_v13, %v538_v10  ;;  %v717_v15 = vadd.f32 %v716_v11, %v615_v5  ;;  %v718_v24 = vpop.f32.mrb[11].mxu0 }
 0x213   : > { %v719_v18 = vadd.f32 %v718_v24, %v619_v61  ;;  %v2509_v61 = vld [vmem:[%s2688_s5 + $0x4] sm:$0xf] }
 0x214   : > { %v2494_v25 = vadd.f32 %v896_v14, %v856_v7  ;;  %v853_v26 = vmul.f32 %v2332_v19, %v717_v15  ;;  %v622_v19 = vsub.s32 2, %v2449_v33  ;;  %v1059_v31 = vrot.slane %v2509_v61, %v614_v48 }
 0x215   : > { %v897_v30 = vmul.f32 %v2380_v49, %v719_v18  ;;  %v1304_v5 = vpop.permute.xlu0 %1303  ;;  %v2513_v49 = vpop.permute.xlu1 %1355  ;;  %v2535_v10 = vrot.slane %v2509_v61, %v618_v2  ;;  %v934_v14 = vsel %vm437_vm1, %v2385_v1, %v2440_v36  ;;  %v935_v1 = vsel %vm437_vm1, %v2436_v35, %v2392_v46 }
 0x216   : > { %v857_v16 = vadd.f32 %v853_v26, %v543_v21  ;;  %v2521_v40 = vrot.slane %v2457_v62, %v622_v19 }
 0x218   : > { %v2500_v34 = vadd.f32 %v897_v30, %v857_v16 }
 0x219   : > { %v1316_v20 = vpop.permute.xlu0 %1315  ;;  %v2537_v13 = vpop.permute.xlu1 %1363 }
 0x21a   : > { %v1330_v46 = vsel %vm437_vm1, %v2446_v56, %v1316_v20  ;;  %v1331_v56 = vsel %vm437_vm1, %v1304_v5, %v2482_v38 }
 0x21d   : > { %v1328_v36 = vpop.permute.xlu0 %1327 }
 0x221   : > { %v1348_v20 = vpop.permute.xlu0 %1347 }
 0x222   : > { %v1375_v33 = vsel %vm437_vm1, %v1348_v20, %v2537_v13 }
 0x225   : > { %v1142_v12 = vpop.f32.mrb[12].mxu0 }
 0x226   : > { %v1143_v17 = vadd.f32 %v1142_v12, %v1059_v31  ;;  %v787_v45 = vpop.f32.mrb[4].mxu1  ;;  %v1144_v50 = vpop.f32.mrb[13].mxu0 }
 0x227   : > { %v788_v48 = vadd.f32 %v787_v45, %v2521_v40  ;;  %v789_v62 = vpop.f32.mrb[5].mxu1  ;;  %v1145_v28 = vadd.f32 %v1144_v50, %v2535_v10  ;;  %v2563_v50 = vpop.permute.xlu1 %1367 }
 0x228   : > { %v1290_v11 = vmul.f32 %v1286_v29, %v1143_v17  ;;  %v790_v7 = vadd.f32 %v789_v62, %v2526_v44 }
 0x229   : > { %v938_v15 = vmul.f32 %v934_v14, %v788_v48  ;;  %v1148_v24 = vpop.f32.mrb[14].mxu0  ;;  %v1334_v14 = vmul.f32 %v1330_v46, %v1145_v28 }
 0x22a   : > { %v982_v2 = vmul.f32 %v978_v53, %v790_v7  ;;  %v793_v18 = vpop.f32.mrb[6].mxu1  ;;  %v1150_v21 = vpop.f32.mrb[15].mxu0  ;;  %v1149_v17 = vadd.f32 %v1148_v24, %v1059_v31 }
 0x22b   : > { %v942_v26 = vadd.f32 %v938_v15, %v898_v43  ;;  %v794_v30 = vadd.f32 %v793_v18, %v2521_v40  ;;  %v795_v16 = vpop.f32.mrb[7].mxu1  ;;  %v1288_v43 = vsel %vm437_vm1, %v2432_v54, %v2442_v42  ;;  %v1151_v37 = vadd.f32 %v1150_v21, %v2535_v10  ;;  %v1388_v21 = vpop.permute.xlu1 %1387 }
 0x22c   : > { %v796_v57 = vadd.f32 %v795_v16, %v2526_v44  ;;  %v1287_v15 = vsel %vm437_vm1, %v2486_v51, %v2438_v59  ;;  %v1289_v59 = vsel %vm437_vm1, %v2434_v27, %v2502_v47 }
 0x22d   : > { %v986_v12 = vadd.f32 %v982_v2, %v942_v26  ;;  %v939_v45 = vmul.f32 %v935_v1, %v794_v30  ;;  %v1154_v29 = vpop.f32.mrb[16].mxu0  ;;  %v1291_v18 = vmul.f32 %v1287_v15, %v1149_v17  ;;  %v1335_v51 = vmul.f32 %v1331_v56, %v1151_v37 }
 0x22e   : > { %v983_v35 = vmul.f32 %v979_v4, %v796_v57  ;;  %v1155_v63 = vadd.f32 %v1154_v29, %v1059_v31  ;;  %v799_v48 = vpop.f32.mrb[8].mxu1  ;;  %v1156_v62 = vpop.f32.mrb[17].mxu0 }
 0x22f   : > { %v1294_v7 = vadd.f32 %v1290_v11, %v986_v12  ;;  %v943_v54 = vadd.f32 %v939_v45, %v2488_v6  ;;  %v800_v42 = vadd.f32 %v799_v48, %v2521_v40  ;;  %v801_v53 = vpop.f32.mrb[9].mxu1  ;;  %v1157_v57 = vadd.f32 %v1156_v62, %v2535_v10  ;;  %v1360_v29 = vpop.permute.xlu0 %1359 }
 0x230   : > { %v1292_v24 = vmul.f32 %v1288_v43, %v1155_v63  ;;  %v802_v2 = vadd.f32 %v801_v53, %v2526_v44  ;;  %v937_v12 = vsel %vm437_vm1, %v2389_v9, %v2444_v60  ;;  %v1396_v37 = vpop.permute.xlu1 %1395 }
 0x231   : > { %v987_v11 = vadd.f32 %v983_v35, %v943_v54  ;;  %v940_v6 = vmul.f32 %v2398_v58, %v800_v42  ;;  %v1160_v26 = vpop.f32.mrb[18].mxu0  ;;  %v1338_v28 = vadd.f32 %v1334_v14, %v1294_v7  ;;  %v1067_v7 = vrot.slane %v2509_v61, %v622_v19 }
 0x232   : > { %v984_v30 = vmul.f32 %v2422_v52, %v802_v2  ;;  %v1161_v38 = vadd.f32 %v1160_v26, %v1059_v31  ;;  %v805_v5 = vpop.f32.mrb[10].mxu1  ;;  %v1162_v16 = vpop.f32.mrb[19].mxu0  ;;  %v981_v52 = vsel %vm437_vm1, %v2414_v22, %v2480_v23  ;;  %v1333_v22 = vsel %vm437_vm1, %v2473_v55, %v1328_v36 }
 0x233   : > { %v1295_v1 = vadd.f32 %v1291_v18, %v987_v11  ;;  %v944_v4 = vadd.f32 %v940_v6, %v2494_v25  ;;  %v806_v58 = vadd.f32 %v805_v5, %v2521_v40  ;;  %v807_v43 = vpop.f32.mrb[11].mxu1  ;;  %v1332_v40 = vsel %vm437_vm1, %v2460_v3, %v2492_v41  ;;  %v1372_v62 = vpop.permute.xlu0 %1371 }
 0x234   : > { %v1293_v27 = vmul.f32 %v1289_v59, %v1161_v38  ;;  %v808_v47 = vadd.f32 %v807_v43, %v2526_v44  ;;  %v1336_v46 = vmul.f32 %v1332_v40, %v1157_v57  ;;  %v1163_v44 = vadd.f32 %v1162_v16, %v2535_v10  ;;  %v1400_v3 = vpop.permute.xlu1 %1399 }
 0x235   : > { %v988_v31 = vadd.f32 %v984_v30, %v944_v4  ;;  %v941_v25 = vmul.f32 %v937_v12, %v806_v58  ;;  %v1339_v17 = vadd.f32 %v1335_v51, %v1295_v1  ;;  %v1374_v55 = vsel %vm437_vm1, %v2498_v32, %v1360_v29 }
 0x236   : > { %v985_v45 = vmul.f32 %v981_v52, %v808_v47  ;;  %v1337_v23 = vmul.f32 %v1333_v22, %v1163_v44  ;;  %v1376_v16 = vsel %vm437_vm1, %v2504_v39, %v2563_v50  ;;  %v1377_v39 = vsel %vm437_vm1, %v2513_v49, %v1372_v62 }
 0x237   : > { %v1296_v9 = vadd.f32 %v1292_v24, %v988_v31  ;;  %v945_v60 = vadd.f32 %v941_v25, %v2500_v34  ;;  %v1392_v41 = vpop.permute.xlu0 %1391  ;;  %v1071_v34 = vrot.slane %v2509_v61, %v626_v8 }
 0x238   : > { %v1408_v10 = vpop.permute.xlu1 %1407 }
 0x239   : > { %v989_v35 = vadd.f32 %v985_v45, %v945_v60  ;;  %v1340_v63 = vadd.f32 %v1336_v46, %v1296_v9  ;;  %v1419_v36 = vsel %vm437_vm1, %v1392_v41, %v1408_v10 }
 0x23b   : > { %v1297_v48 = vadd.f32 %v1293_v27, %v989_v35  ;;  %v1404_v56 = vpop.permute.xlu0 %1403 }
 0x23c   : > { %v1418_v61 = vsel %vm437_vm1, %v1388_v21, %v1404_v56  ;;  %v1412_v26 = vpop.permute.xlu1 %1411 }
 0x23d   : > { %v1341_v14 = vadd.f32 %v1337_v23, %v1297_v48  ;;  %v1420_v21 = vsel %vm437_vm1, %v1396_v37, %v1412_v26 }
 0x23f   : > { %v1416_v57 = vpop.permute.xlu0 %1415 }
 0x240   : > { %v1421_v47 = vsel %vm437_vm1, %v1400_v3, %v1416_v57 }
 0x245   : > { %v1231_v54 = vpop.f32.mrb[20].mxu0 }
 0x246   : > { %v1232_v42 = vadd.f32 %v1231_v54, %v1067_v7  ;;  %v1233_v53 = vpop.f32.mrb[21].mxu0  ;;  %v1237_v15 = vpop.f32.mrb[12].mxu1 }
 0x247   : > { %v1234_v24 = vadd.f32 %v1233_v53, %v1071_v34  ;;  %v1238_v2 = vadd.f32 %v1237_v15, %v1067_v7  ;;  %v1239_v19 = vpop.f32.mrb[13].mxu1 }
 0x248   : > { %v1378_v8 = vmul.f32 %v1374_v55, %v1232_v42  ;;  %v1240_v18 = vadd.f32 %v1239_v19, %v1071_v34 }
 0x249   : > { %v1422_v11 = vmul.f32 %v1418_v61, %v1234_v24  ;;  %v1379_v6 = vmul.f32 %v1375_v33, %v1238_v2 }
 0x24a   : > { %v1382_v32 = vadd.f32 %v1378_v8, %v1338_v28  ;;  %v1423_v59 = vmul.f32 %v1419_v36, %v1240_v18  ;;  %v1243_v51 = vpop.f32.mrb[14].mxu1 }
 0x24b   : > { %v1383_v30 = vadd.f32 %v1379_v6, %v1339_v17  ;;  %v1244_v38 = vadd.f32 %v1243_v51, %v1067_v7  ;;  %v1245_v5 = vpop.f32.mrb[15].mxu1 }
 0x24c   : > { %v1246_v13 = vadd.f32 %v1245_v5, %v1071_v34  ;;  %v1426_v20 = vadd.f32 %v1422_v11, %v1382_v32 }
 0x24d   : > { %v1380_v1 = vmul.f32 %v1376_v16, %v1244_v38  ;;  %v1427_v4 = vadd.f32 %v1423_v59, %v1383_v30 }
 0x24e   : > { %v1424_v58 = vmul.f32 %v1420_v21, %v1246_v13  ;;  %v1249_v28 = vpop.f32.mrb[16].mxu1  ;;  %1430 = vrot.lane.b32.xlu1 %v1426_v20, %s2073_s19 }
 0x24f   : > { %v1384_v43 = vadd.f32 %v1380_v1, %v1340_v63  ;;  %v1250_v12 = vadd.f32 %v1249_v28, %v1067_v7  ;;  %v1251_v27 = vpop.f32.mrb[17].mxu1  ;;  %1432 = vrot.lane.b32.xlu0 %v1427_v4, %s2073_s19 }
 0x250   : > { %v1252_v50 = vadd.f32 %v1251_v27, %v1071_v34 }
 0x251   : > { %v1381_v52 = vmul.f32 %v1377_v39, %v1250_v12  ;;  %v1428_v31 = vadd.f32 %v1424_v58, %v1384_v43 }
 0x252   : > { %v1425_v25 = vmul.f32 %v1421_v47, %v1252_v50 }
 0x253   : > { %v1385_v17 = vadd.f32 %v1381_v52, %v1341_v14  ;;  %1434 = vrot.lane.b32.xlu1 %v1428_v31, %s2073_s19 }
 0x255   : > { %v1429_v40 = vadd.f32 %v1425_v25, %v1385_v17 }
 0x257   : > { %1436 = vrot.lane.b32.xlu0 %v1429_v40, %s2073_s19 }
 0x2c0   : > { %v1431_v45 = vpop.permute.xlu1 %1430 }
 0x2c1   : > { %v1438_v29 = vadd.f32 %v1431_v45, %v1426_v20  ;;  %v1433_v46 = vpop.permute.xlu0 %1432 }
 0x2c2   : > { %v1439_v9 = vadd.f32 %v1433_v46, %v1427_v4 }
 0x2c3   : > { %1442 = vst [vmem:[%s276_s28] sm:$0xff] %v1438_v29 }
 0x2c4   : > { %1443 = vst [vmem:[%s276_s28 + $0x8] sm:$0xff] %v1439_v9 }
 0x2c5   : > { %v1435_v0 = vpop.permute.xlu1 %1434 }
 0x2c6   : > { %v1440_v49 = vadd.f32 %v1435_v0, %v1428_v31 }
 0x2c8   : > { %1444 = vst [vmem:[%s276_s28 + $0x10] sm:$0xff] %v1440_v49 }
 0x2c9   : > { %v1437_v60 = vpop.permute.xlu0 %1436 }
 0x2ca   : > { %v1441_v44 = vadd.f32 %v1437_v60, %v1429_v40 }
 0x2cc   : > { %1445 = vst [vmem:[%s276_s28 + $0x18] sm:$0xff] %v1441_v44 }
 0x2cd   : > { %1998 = shalt.err (!%p1995_p7)
}
 0x2ce   : > { %s1999_s17 = scalar_lea.hbm %s2640_s12, 512  ;;  %s2003_s20 = scalar_lea.hbm %s2689_s6, 1024 }
 0x2cf   : > { %p2000_p8 = scmp.ne.s32.totalorder %s2640_s12, %s1999_s17  ;;  %p2004_p1 = scmp.lt.u32.totalorder %s2640_s12, %s2689_s6 }
 0x2d0   : > { %p2005_p0 = scmp.lt.u32.totalorder %s2003_s20, %s1999_s17  ;;  %p2007_p6 = scmp.lt.u32.totalorder %s1999_s17, %s2640_s12 }
 0x2d1   : > { %p2001_p11 = pnand %p2000_p8, %p2700_p9 }
 0x2d2   : > { %p2006_p5 = por %p2005_p0, %p2004_p1 }
 0x2d3   : > { %p2002_p13 = pneg %p2001_p11 }
 0x2d4   : > { %p2008_p10 = por %p2007_p6, %p2006_p5 }
 0x2d6   : > { %p2009_p12 = pnand %p2008_p10, %p2002_p13 }
 0x2d8   : > { %2012 = shalt.err (!%p2009_p12)
}
 0x2d9   : > { %s2075_s10 = smov 128   ;;  %s2076_s14 = smov 8  }
 0x2da   : > { %1841 = dma.vmem_to_hbm [thread:$0]  (%p2700_p9), %s2635_s29, 512, %s2640_s12, %s2642_s11, %s2075_s10, %s2075_s10, %s2076_s14  }
 0x2db PF: > { %p1853_p2 = scmp.ge.s32.totalorder %s2051_s24, 2  ;;  %s1475_s13 = sand.u32 1, %s2039_s21  }
 0x2dc   : > { %p2701_p3 = scmp.ne.s32.totalorder %s2694_s8, 0  ;;  %s1476_s9 = scalar_lea.sflag [#allocation4], %s1475_s13 }
 0x2de   : > { %p1848_p4 = pnand %p1853_p2, %p2701_p3 }
 0x2e0   : > { %2034 = dma.done.wait (!%p1848_p4), %s1476_s9, 512  }
 0x2e1   : > { %2036 = vsyncadd (!%p1848_p4), %s1476_s9, 4294966784  ;;  %p17_p7 = scmp.ge.s32.totalorder %s2137_s27, 4   ;;  %s2702_s21 = smov %s2043_s22 }
 0x2e2   : > { %s2703_s22 = smov %s2047_s23  ;;  %s2704_s23 = smov %s2148_s30 }
 0x2e3   : > { %s2705_s24 = smov %s2137_s27  ;;  %19 = sbr.rel (!%p17_p7) target bundleno = 4 (0x4), region = 87 }
 0x2ea   :  { %1481 = vsyncpa [#allocation3], 1 }
 0x2eb   :  { %1483 = vsyncpa [#allocation3 + $0x1], 1 }
 0x2ec   :  { %1484 = vsyncpa [#allocation4], 1 }
 0x2ed   :  { %1486 = vsyncpa [#allocation4 + $0x1], 1 }

</bundles_post_ra>
